<compile_context>
chip_gen: v6e
topology: v6e:2x2x1
jax: 0.10.0
libtpu: 0.0.40
codegen_flags: <defaults>
</compile_context>

<pallas_src>
import functools

import jax
import jax.numpy as jnp
from jax.experimental import pallas as pl
from jax.experimental.pallas import tpu as pltpu


def _round_up(x, m):
    return (x + m - 1) // m * m


def _vmem_limit_bytes():
    """Per-generation scoped-VMEM limit (~56 MiB on v7x, ~100 MiB on v5e/v6e)."""
    cap = 64 * 1024 * 1024
    try:
        info_cap = pltpu.get_tpu_info().vmem_capacity_bytes
        if info_cap:
            cap = int(info_cap)
    except Exception:
        pass
    return int(min(cap - 8 * 1024 * 1024, 100 * 1024 * 1024))


_VMEM_LIMIT = _vmem_limit_bytes()
_BN_EPS = 1e-5


def _compiler_params(sem):
    return pltpu.CompilerParams(dimension_semantics=sem,
                                vmem_limit_bytes=_VMEM_LIMIT)


def _pick_tile(total, cap=512):
    """Largest multiple of 16 that divides `total` and is <= cap."""
    best = 16
    d = 16
    while d <= min(total, cap):
        if total % d == 0:
            best = d
        d += 16
    return best


def _pick_g(n, hw):
    """Images per block for the in-kernel 3x3 conv so the output row block is
    8-aligned; None -> fall back to im2col."""
    for g in range(1, n + 1):
        if n % g == 0 and (g * hw) % 8 == 0:
            return g
    return None


def _pad_rows(x, mp):
    return x if x.shape[0] == mp else jnp.pad(x, ((0, mp - x.shape[0]), (0, 0)))


# ----------------------------------------------------------------------------
# Pallas kernels
# ----------------------------------------------------------------------------
def _mm_stats_kernel(a_ref, w_ref, b_ref, y_ref, s1_ref, s2_ref, *,
                     valid_m, tm, need_mask):
    """bf16 matmul + bias with f32 accumulation; writes bf16 raw output and
    per-M-tile column sum / sum-of-squares for the two-pass BatchNorm."""
    acc = jnp.dot(a_ref[...], w_ref[...], preferred_element_type=jnp.float32)
    acc = acc + b_ref[...]
    y_ref[...] = acc.astype(jnp.bfloat16)
    if need_mask:
        rows = (jax.lax.broadcasted_iota(jnp.int32, acc.shape, 0)
                + pl.program_id(0) * tm)
        mask = rows < valid_m
        s1_ref[...] = jnp.sum(jnp.where(mask, acc, 0.0), axis=0,
                              keepdims=True)[None]
        s2_ref[...] = jnp.sum(jnp.where(mask, acc * acc, 0.0), axis=0,
                              keepdims=True)[None]
    else:
        s1_ref[...] = jnp.sum(acc, axis=0, keepdims=True)[None]
        s2_ref[...] = jnp.sum(acc * acc, axis=0, keepdims=True)[None]


def _conv3x3_stats_kernel(x_ref, w_ref, b_ref, y_ref, s1_ref, s2_ref, *,
                          hh, ww, g):
    """Stride-1 3x3 conv: 9 taps sliced in-kernel from a halo'd NHWC block, each
    feeding the MXU and accumulating in f32 (no im2col HBM materialization)."""
    cp = x_ref.shape[-1]
    rows = g * hh * ww
    acc = jnp.zeros((rows, w_ref.shape[-1]), jnp.float32)
    for t in range(9):
        di, dj = divmod(t, 3)
        tap = x_ref[:, di:di + hh, dj:dj + ww, :].reshape(rows, cp)
        acc = acc + jnp.dot(tap, w_ref[t], preferred_element_type=jnp.float32)
    acc = acc + b_ref[...]
    y_ref[...] = acc.astype(jnp.bfloat16)
    s1_ref[...] = jnp.sum(acc, axis=0, keepdims=True)[None]
    s2_ref[...] = jnp.sum(acc * acc, axis=0, keepdims=True)[None]


def _bn_apply_kernel(*refs, has_res, relu, valid_m, tm, need_mask):
    """Second BN pass: y*scale + shift (+residual) (+ReLU), padded rows zeroed."""
    y_ref, sc_ref, sh_ref = refs[0], refs[1], refs[2]
    o_ref = refs[-1]
    v = y_ref[...].astype(jnp.float32) * sc_ref[...] + sh_ref[...]
    if has_res:
        v = v + refs[3][...].astype(jnp.float32)
    if relu:
        v = jnp.maximum(v, 0.0)
    if need_mask:
        rows = (jax.lax.broadcasted_iota(jnp.int32, v.shape, 0)
                + pl.program_id(0) * tm)
        v = jnp.where(rows < valid_m, v, 0.0)
    o_ref[...] = v.astype(jnp.bfloat16)


def _max9_kernel(*refs):
    """Elementwise max over the 9 pooling views (pure VPU, bf16, lane-dense)."""
    o_ref = refs[-1]
    m = refs[0][...]
    for r in refs[1:-1]:
        m = jnp.maximum(m, r[...])
    o_ref[...] = m


def _avgpool_kernel(x_ref, o_ref):
    o_ref[...] = jnp.mean(x_ref[...].astype(jnp.float32), axis=1)


def _head_kernel(x_ref, g_ref, b_ref, w1_ref, b1_ref, w2_ref, b2_ref,
                 w3_ref, b3_ref, o_ref, *, n_feat, eps):
    """Fused head: sigmoid -> LayerNorm -> fc1/ReLU -> fc2/ReLU -> fc3 (bf16 MXU)."""
    x = x_ref[...]
    cols = jax.lax.broadcasted_iota(jnp.int32, x.shape, 1)
    valid = cols < n_feat
    s = jnp.where(valid, jax.nn.sigmoid(x), 0.0)
    inv = 1.0 / float(n_feat)
    mean = jnp.sum(s, axis=-1, keepdims=True) * inv
    var = jnp.sum(jnp.where(valid, jnp.square(s - mean), 0.0),
                  axis=-1, keepdims=True) * inv
    h = (s - mean) * jax.lax.rsqrt(var + eps) * g_ref[...] + b_ref[...]
    h1 = jnp.maximum(
        jnp.dot(h.astype(jnp.bfloat16), w1_ref[...],
                preferred_element_type=jnp.float32) + b1_ref[...], 0.0)
    h2 = jnp.maximum(
        jnp.dot(h1.astype(jnp.bfloat16), w2_ref[...],
                preferred_element_type=jnp.float32) + b2_ref[...], 0.0)
    o_ref[...] = jnp.dot(h2.astype(jnp.bfloat16), w3_ref[...],
                         preferred_element_type=jnp.float32) + b3_ref[...]


# ----------------------------------------------------------------------------
# pallas_call wrappers
# ----------------------------------------------------------------------------
def _mm_stats_call(a, w, b, valid_m):
    Mp, Kp = a.shape
    Np = w.shape[1]
    tm = _pick_tile(Mp, 512)
    tn = 256 if Np % 256 == 0 else Np       # Np is always a multiple of 128
    mb, nb = Mp // tm, Np // tn
    kern = functools.partial(_mm_stats_kernel, valid_m=valid_m, tm=tm,
                             need_mask=valid_m < Mp)
    return pl.pallas_call(
        kern,
        out_shape=(jax.ShapeDtypeStruct((Mp, Np), jnp.bfloat16),
                   jax.ShapeDtypeStruct((mb, 1, Np), jnp.float32),
                   jax.ShapeDtypeStruct((mb, 1, Np), jnp.float32)),
        grid=(mb, nb),
        in_specs=[pl.BlockSpec((tm, Kp), lambda m, n: (m, 0)),
                  pl.BlockSpec((Kp, tn), lambda m, n: (0, n)),
                  pl.BlockSpec((1, tn), lambda m, n: (0, n))],
        out_specs=(pl.BlockSpec((tm, tn), lambda m, n: (m, n)),
                   pl.BlockSpec((1, 1, tn), lambda m, n: (m, 0, n)),
                   pl.BlockSpec((1, 1, tn), lambda m, n: (m, 0, n))),
        compiler_params=_compiler_params(("parallel", "parallel")),
    )(a.astype(jnp.bfloat16), w, b)


def _conv3x3_call(xp, w3, b, g):
    n, hp, wp, cp = xp.shape
    hh, ww = hp - 2, wp - 2
    Np = w3.shape[-1]
    m_out = n * hh * ww
    Mp = _round_up(m_out, 16)
    tn = 256 if Np % 256 == 0 else Np
    ib, nb = n // g, Np // tn
    rows = g * hh * ww
    kern = functools.partial(_conv3x3_stats_kernel, hh=hh, ww=ww, g=g)
    return pl.pallas_call(
        kern,
        out_shape=(jax.ShapeDtypeStruct((Mp, Np), jnp.bfloat16),
                   jax.ShapeDtypeStruct((ib, 1, Np), jnp.float32),
                   jax.ShapeDtypeStruct((ib, 1, Np), jnp.float32)),
        grid=(ib, nb),
        in_specs=[pl.BlockSpec((g, hp, wp, cp), lambda i, j: (i, 0, 0, 0)),
                  pl.BlockSpec((9, cp, tn), lambda i, j: (0, 0, j)),
                  pl.BlockSpec((1, tn), lambda i, j: (0, j))],
        out_specs=(pl.BlockSpec((rows, tn), lambda i, j: (i, j)),
                   pl.BlockSpec((1, 1, tn), lambda i, j: (i, 0, j)),
                   pl.BlockSpec((1, 1, tn), lambda i, j: (i, 0, j))),
        compiler_params=_compiler_params(("parallel", "parallel")),
    )(xp, w3, b)


def _bn_apply_call(y, scale, shift, res, relu, valid_m):
    Mp, Np = y.shape
    tm = _pick_tile(Mp, 512)
    mb = Mp // tm
    in_specs = [pl.BlockSpec((tm, Np), lambda m: (m, 0)),
                pl.BlockSpec((1, Np), lambda m: (0, 0)),
                pl.BlockSpec((1, Np), lambda m: (0, 0))]
    args = [y, scale, shift]
    if res is not None:
        in_specs.append(pl.BlockSpec((tm, Np), lambda m: (m, 0)))
        args.append(res)
    kern = functools.partial(_bn_apply_kernel, has_res=res is not None,
                             relu=relu, valid_m=valid_m, tm=tm,
                             need_mask=valid_m < Mp)
    return pl.pallas_call(
        kern,
        out_shape=jax.ShapeDtypeStruct((Mp, Np), jnp.bfloat16),
        grid=(mb,),
        in_specs=in_specs,
        out_specs=pl.BlockSpec((tm, Np), lambda m: (m, 0)),
        compiler_params=_compiler_params(("parallel",)),
    )(*args)


def _bn_scale_shift(s1, s2, gamma, beta, count, eps):
    """Finalize single-pass BN statistics (tiny per-channel vector math)."""
    ssum = jnp.sum(s1, axis=(0, 1))
    ssq = jnp.sum(s2, axis=(0, 1))
    mean = ssum / float(count)
    var = jnp.maximum(ssq / float(count) - mean * mean, 0.0)
    inv = gamma * jax.lax.rsqrt(var + eps)
    shift = beta - mean * inv
    return inv, shift


# ----------------------------------------------------------------------------
# Activation format helpers (padded (Mp, Cp) bf16 + metadata)
# ----------------------------------------------------------------------------
def _to_spatial(act):
    x = act["x"]
    N, H, W = act["dims"]
    if x.shape[0] != act["m"]:
        x = x[:act["m"]]
    return x.reshape(N, H, W, x.shape[-1])


def _im2col(xs, kh, kw, stride, pad):
    """Tap-major im2col glue (used only for the 7x7 stem and stride-2 3x3 convs)."""
    N, H, W, C = xs.shape
    Ho = (H + 2 * pad - kh) // stride + 1
    Wo = (W + 2 * pad - kw) // stride + 1
    xp = jnp.pad(xs, ((0, 0), (pad, pad), (pad, pad), (0, 0)))
    cols = []
    for i in range(kh):
        for j in range(kw):
            cols.append(
                xp[:, i:i + stride * (Ho - 1) + 1:stride,
                   j:j + stride * (Wo - 1) + 1:stride, :].reshape(N * Ho * Wo, C))
    return jnp.concatenate(cols, axis=1), Ho, Wo


# ----------------------------------------------------------------------------
# Conv / pool building blocks
# ----------------------------------------------------------------------------
def conv_bn(act, cp, *, relu=False, residual=None):
    """Conv + training-mode BatchNorm (+residual, +ReLU) via the two-pass scheme."""
    N, H, W = act["dims"]
    kh, kw, stride, pad = cp["kh"], cp["kw"], cp["stride"], cp["pad"]

    if kh == 1 and stride == 1:
        Ho, Wo, M_out = H, W, act["m"]
        y, s1, s2 = _mm_stats_call(act["x"], cp["w2d"], cp["b"], M_out)
    elif kh == 1:
        xs = _to_spatial(act)[:, ::stride, ::stride, :]
        Ho, Wo = xs.shape[1], xs.shape[2]
        M_out = N * Ho * Wo
        a = _pad_rows(xs.reshape(M_out, xs.shape[-1]), _round_up(M_out, 16))
        y, s1, s2 = _mm_stats_call(a, cp["w2d"], cp["b"], M_out)
    else:
        Ho = (H + 2 * pad - kh) // stride + 1
        Wo = (W + 2 * pad - kw) // stride + 1
        M_out = N * Ho * Wo
        done = False
        if kh == 3 and stride == 1:
            g = _pick_g(N, Ho * Wo)
            xs = _to_spatial(act)
            blk_bytes = (g or 0) * (H + 2) * (W + 2) * xs.shape[-1] * 2
            if g is not None and blk_bytes <= 16 * 1024 * 1024:
                xp = jnp.pad(xs, ((0, 0), (pad, pad), (pad, pad), (0, 0)))
                try:
                    y, s1, s2 = _conv3x3_call(xp, cp["w3d"], cp["b"], g)
                    done = True
                except Exception:
                    done = False   # safety net: fall back to im2col if lowering fails
        if not done:
            xs = _to_spatial(act)
            a, Ho, Wo = _im2col(xs, kh, kw, stride, pad)
            M_out = N * Ho * Wo
            Kp = cp["w2d"].shape[0]
            Mp = _round_up(M_out, 16)
            a = jnp.pad(a, ((0, Mp - M_out), (0, Kp - a.shape[1])))
            y, s1, s2 = _mm_stats_call(a, cp["w2d"], cp["b"], M_out)

    scale, shift = _bn_scale_shift(s1, s2, cp["g"], cp["bt"], M_out, _BN_EPS)
    res = residual["x"] if residual is not None else None
    out = _bn_apply_call(y, scale, shift, res, relu, M_out)
    return {"x": out, "m": M_out, "dims": (N, Ho, Wo), "c": cp["n_out"]}


def maxpool(act, k=3, stride=2, pad=1):
    xs = _to_spatial(act)                       # (N, H, W, Cp) bf16, lane-dense
    N, H, W, Cp = xs.shape
    Ho = (H + 2 * pad - k) // stride + 1
    Wo = (W + 2 * pad - k) // stride + 1
    xp = jnp.pad(xs, ((0, 0), (pad, pad), (pad, pad), (0, 0)),
                 constant_values=float("-inf"))
    M = N * Ho * Wo
    Mp = _round_up(M, 16)
    views = []
    for i in range(k):
        for j in range(k):
            v = xp[:, i:i + stride * (Ho - 1) + 1:stride,
                   j:j + stride * (Wo - 1) + 1:stride, :].reshape(M, Cp)
            views.append(_pad_rows(v, Mp))
    tr = _pick_tile(Mp, 2048)
    out = pl.pallas_call(
        _max9_kernel,
        out_shape=jax.ShapeDtypeStruct((Mp, Cp), jnp.bfloat16),
        grid=(Mp // tr,),
        in_specs=[pl.BlockSpec((tr, Cp), lambda r: (r, 0)) for _ in views],
        out_specs=pl.BlockSpec((tr, Cp), lambda r: (r, 0)),
        compiler_params=_compiler_params(("parallel",)),
    )(*views)
    return {"x": out, "m": M, "dims": (N, Ho, Wo), "c": act["c"]}


def adaptive_avgpool(act):
    xs = act["x"]
    N, H, W = act["dims"]
    if xs.shape[0] != act["m"]:
        xs = xs[:act["m"]]
    Cp = xs.shape[-1]
    x3 = xs.reshape(N, H * W, Cp)
    out = pl.pallas_call(
        _avgpool_kernel,
        out_shape=jax.ShapeDtypeStruct((N, Cp), jnp.float32),
        grid=(1,),
        in_specs=[pl.BlockSpec((N, H * W, Cp), lambda i: (0, 0, 0))],
        out_specs=pl.BlockSpec((N, Cp), lambda i: (0, 0)),
        compiler_params=_compiler_params(("arbitrary",)),
    )(x3)
    return out[:, :act["c"]]


def mlp_head(all_dim, hp):
    M, F = all_dim.shape
    Fp = hp["ln_g"].shape[1]
    Mp = _round_up(M, 8)
    x_p = jnp.pad(all_dim.astype(jnp.float32), ((0, Mp - M), (0, Fp - F)))
    args = [x_p, hp["ln_g"], hp["ln_b"], hp["w1"], hp["b1"],
            hp["w2"], hp["b2"], hp["w3"], hp["b3"]]
    out = pl.pallas_call(
        functools.partial(_head_kernel, n_feat=F, eps=1e-5),
        out_shape=jax.ShapeDtypeStruct((Mp, hp["w3"].shape[1]), jnp.float32),
        grid=(1,),
        in_specs=[pl.BlockSpec(a.shape, lambda i, nd=a.ndim: (0,) * nd)
                  for a in args],
        out_specs=pl.BlockSpec((Mp, hp["w3"].shape[1]), lambda i: (0, 0)),
        compiler_params=_compiler_params(("arbitrary",)),
    )(*args)
    return out[:M, :1]


# ----------------------------------------------------------------------------
# Model
# ----------------------------------------------------------------------------
def bottleneck_block(act, bp):
    identity = conv_bn(act, bp["ds"]) if "ds" in bp else act
    # NOTE: the reference `block` has no intermediate ReLUs -- only after the add.
    y = conv_bn(act, bp["conv1"])
    y = conv_bn(y, bp["conv2"])
    y = conv_bn(y, bp["conv3"], relu=True, residual=identity)
    return y


def co_single_forward(prep, img_nchw, physio, oral):
    N, C, H, W = img_nchw.shape
    x = jnp.transpose(img_nchw, (0, 2, 3, 1)).astype(jnp.bfloat16)
    act = {"x": x.reshape(N * H * W, C), "m": N * H * W, "dims": (N, H, W), "c": C}

    act = conv_bn(act, prep["init"], relu=True)
    act = maxpool(act)
    for layer_name in ("layer1", "layer2", "layer3", "layer4"):
        for bp in prep[layer_name]:
            act = bottleneck_block(act, bp)

    img_feat = adaptive_avgpool(act)                         # (N, 2048) f32
    all_dim = jnp.concatenate(
        [img_feat, physio.astype(jnp.float32), oral.astype(jnp.float32)], axis=1)
    return mlp_head(all_dim, prep["head"])


# ----------------------------------------------------------------------------
# Deterministic parameter init (PyTorch-style layouts)
# ----------------------------------------------------------------------------
def init_params(key, in_channels, layers):
    keys = iter(jax.random.split(key, 256))

    def nk():
        return next(keys)

    def conv_p(o, c, kh, kw):
        fan = c * kh * kw
        w = jax.random.normal(nk(), (o, c, kh, kw), jnp.float32) / jnp.sqrt(float(fan))
        b = jax.random.normal(nk(), (o,), jnp.float32) * 0.01
        return w, b

    def bn_p(c):
        return jnp.ones((c,), jnp.float32), jnp.zeros((c,), jnp.float32)

    def lin_p(i, o):
        w = jax.random.normal(nk(), (i, o), jnp.float32) / jnp.sqrt(float(i))
        b = jax.random.normal(nk(), (o,), jnp.float32) * 0.01
        return w, b

    p = {}
    p["init_conv_w"], p["init_conv_b"] = conv_p(64, in_channels, 7, 7)
    p["init_bn_g"], p["init_bn_b"] = bn_p(64)

    in_ch = 64

    def make_layer(num_blocks, out_ch, stride):
        nonlocal in_ch
        blocks = []
        for bi in range(num_blocks):
            s = stride if bi == 0 else 1
            bp = {"stride": s}
            bp["conv1_w"], bp["conv1_b"] = conv_p(out_ch, in_ch, 1, 1)
            bp["bn1_g"], bp["bn1_b"] = bn_p(out_ch)
            bp["conv2_w"], bp["conv2_b"] = conv_p(out_ch, out_ch, 3, 3)
            bp["bn2_g"], bp["bn2_b"] = bn_p(out_ch)
            bp["conv3_w"], bp["conv3_b"] = conv_p(out_ch * 4, out_ch, 1, 1)
            bp["bn3_g"], bp["bn3_b"] = bn_p(out_ch * 4)
            if bi == 0 and (s != 1 or in_ch != out_ch * 4):
                bp["ds_conv_w"], bp["ds_conv_b"] = conv_p(out_ch * 4, in_ch, 1, 1)
                bp["ds_bn_g"], bp["ds_bn_b"] = bn_p(out_ch * 4)
            blocks.append(bp)
            in_ch = out_ch * 4
        return blocks

    p["layer1"] = make_layer(layers[0], 64, 1)
    p["layer2"] = make_layer(layers[1], 128, 2)
    p["layer3"] = make_layer(layers[2], 256, 2)
    p["layer4"] = make_layer(layers[3], 512, 2)

    all_features = 2048 + 4 + 7
    p["ln_g"] = jnp.ones((all_features,), jnp.float32)
    p["ln_b"] = jnp.zeros((all_features,), jnp.float32)
    p["fc1_w"], p["fc1_b"] = lin_p(all_features, 512)
    p["fc2_w"], p["fc2_b"] = lin_p(512, 256)
    p["fc3_w"], p["fc3_b"] = lin_p(256, 1)
    return p


def prepare_params(p):
    """One-time weight prep: bf16 matmul-form conv weights (tap-major for >1x1
    kernels), padded bias/BN/LN vectors, bf16 head weights."""

    def conv_entry(w, b, g, bt, stride, pad, in_cp=None):
        O, C, kh, kw = w.shape
        Np = _round_up(O, 128)
        ent = {"n_out": O, "kh": kh, "kw": kw, "stride": stride, "pad": pad,
               "b": jnp.zeros((1, Np), jnp.float32).at[0, :O].set(b),
               "g": jnp.zeros((1, Np), jnp.float32).at[0, :O].set(g),
               "bt": jnp.zeros((1, Np), jnp.float32).at[0, :O].set(bt)}
        if kh == 1 and kw == 1:
            Kp = _round_up(C, 128)
            ent["w2d"] = jnp.zeros((Kp, Np), jnp.bfloat16).at[:C, :O].set(
                w.reshape(O, C).T.astype(jnp.bfloat16))
        else:
            cp_in = _round_up(C, 128) if in_cp is None else in_cp
            taps = kh * kw
            wt = jnp.transpose(w, (2, 3, 1, 0)).reshape(taps, C, O)
            w3d = jnp.zeros((taps, cp_in, Np), jnp.bfloat16).at[:, :C, :O].set(
                wt.astype(jnp.bfloat16))
            ent["w3d"] = w3d
            K = taps * cp_in
            Kp = _round_up(K, 128)
            ent["w2d"] = jnp.zeros((Kp, Np), jnp.bfloat16).at[:K, :].set(
                w3d.reshape(K, Np))
        return ent

    prep = {"init": conv_entry(p["init_conv_w"], p["init_conv_b"],
                               p["init_bn_g"], p["init_bn_b"], 2, 3,
                               in_cp=p["init_conv_w"].shape[1])}
    for ln in ("layer1", "layer2", "layer3", "layer4"):
        blocks = []
        for bp in p[ln]:
            s = bp["stride"]
            nb = {"conv1": conv_entry(bp["conv1_w"], bp["conv1_b"],
                                      bp["bn1_g"], bp["bn1_b"], 1, 0),
                  "conv2": conv_entry(bp["conv2_w"], bp["conv2_b"],
                                      bp["bn2_g"], bp["bn2_b"], s, 1),
                  "conv3": conv_entry(bp["conv3_w"], bp["conv3_b"],
                                      bp["bn3_g"], bp["bn3_b"], 1, 0)}
            if "ds_conv_w" in bp:
                nb["ds"] = conv_entry(bp["ds_conv_w"], bp["ds_conv_b"],
                                      bp["ds_bn_g"], bp["ds_bn_b"], s, 0)
            blocks.append(nb)
        prep[ln] = blocks

    F = p["ln_g"].shape[0]
    Fp = _round_up(F, 128)
    prep["head"] = {
        "ln_g": jnp.zeros((1, Fp), jnp.float32).at[0, :F].set(p["ln_g"]),
        "ln_b": jnp.zeros((1, Fp), jnp.float32).at[0, :F].set(p["ln_b"]),
        "w1": jnp.zeros((Fp, 512), jnp.bfloat16).at[:F].set(
            p["fc1_w"].astype(jnp.bfloat16)),
        "b1": p["fc1_b"].reshape(1, 512),
        "w2": p["fc2_w"].astype(jnp.bfloat16),
        "b2": p["fc2_b"].reshape(1, 256),
        "w3": jnp.zeros((256, 128), jnp.bfloat16).at[:, :1].set(
            p["fc3_w"].astype(jnp.bfloat16)),
        "b3": jnp.zeros((1, 128), jnp.float32).at[0, :1].set(p["fc3_b"]),
    }
    return prep


if __name__ == "__main__":
    key = jax.random.PRNGKey(0)
    kp, k1, k2, k3 = jax.random.split(key, 4)

    # Small shapes: batch=2, in_channels=3, 32x32 image (downsampled 32x -> 1x1),
    # physio has 4 features, oral has 7 features (all_features = 2048+4+7 = 2059),
    # layers = [1, 1, 1, 1].
    params = init_params(kp, in_channels=3, layers=[1, 1, 1, 1])
    prep = prepare_params(params)

    img = jax.random.normal(k1, (2, 3, 32, 32), jnp.float32)
    physio = jax.random.normal(k2, (2, 4), jnp.float32)
    oral = jax.random.normal(k3, (2, 7), jnp.float32)

    out = co_single_forward(prep, img, physio, oral)
    out = jax.block_until_ready(out)
    assert out.shape == (2, 1)
    assert bool(jnp.all(jnp.isfinite(out)))
    print("KERNEL_OK")
</pallas_src>

<mosaic_0001>
module attributes {stable_mosaic.version = 11 : i64} {
  func.func @_mm_stats_kernel(%arg0: i32, %arg1: i32, %arg2: memref<512x256xbf16, #tpu.memory_space<vmem>>, %arg3: memref<256x128xbf16, #tpu.memory_space<vmem>>, %arg4: memref<1x128xf32, #tpu.memory_space<vmem>>, %arg5: memref<512x128xbf16, #tpu.memory_space<vmem>>, %arg6: memref<1x1x128xf32, #tpu.memory_space<vmem>>, %arg7: memref<1x1x128xf32, #tpu.memory_space<vmem>>) attributes {dimension_semantics = [#tpu.dimension_semantics<parallel>, #tpu.dimension_semantics<parallel>], iteration_bounds = array<i64: 1, 1>, scalar_prefetch = 0 : i64, scratch_operands = 0 : i64, tpu.core_type = #tpu.core_type<tc>, window_params = [{transform_indices = @transform_0, window_bounds = array<i64: 512, 256>}, {transform_indices = @transform_1, window_bounds = array<i64: 256, 128>}, {transform_indices = @transform_2, window_bounds = array<i64: 1, 128>}, {transform_indices = @transform_3, window_bounds = array<i64: 512, 128>}, {transform_indices = @transform_4, window_bounds = array<i64: 1, 1, 128>}, {transform_indices = @transform_5, window_bounds = array<i64: 1, 1, 128>}]} {
    %c0 = arith.constant 0 : index
    %c0_0 = arith.constant 0 : index
    %0 = vector.load %arg2[%c0, %c0_0] : memref<512x256xbf16, #tpu.memory_space<vmem>>, vector<512x256xbf16>
    %c0_1 = arith.constant 0 : index
    %c0_2 = arith.constant 0 : index
    %1 = vector.load %arg3[%c0_1, %c0_2] : memref<256x128xbf16, #tpu.memory_space<vmem>>, vector<256x128xbf16>
    %cst = arith.constant dense<0.000000e+00> : vector<512x128xf32>
    %2 = tpu.matmul %0, %1, %cst {dimension_numbers = #tpu.dot_dimension_numbers<[1], [0], [0], [1], [0, 0, 1, 1], [], []>} : vector<512x256xbf16>, vector<256x128xbf16>, vector<512x128xf32> -> vector<512x128xf32>
    %c0_3 = arith.constant 0 : index
    %c0_4 = arith.constant 0 : index
    %3 = vector.load %arg4[%c0_3, %c0_4] : memref<1x128xf32, #tpu.memory_space<vmem>>, vector<1x128xf32>
    %4 = vector.broadcast %3 : vector<1x128xf32> to vector<512x128xf32>
    %5 = arith.addf %2, %4 : vector<512x128xf32>
    %6 = arith.truncf %5 : vector<512x128xf32> to vector<512x128xbf16>
    %c0_5 = arith.constant 0 : index
    %c0_6 = arith.constant 0 : index
    %7 = vector.load %arg5[%c0_5, %c0_6] : memref<512x128xbf16, #tpu.memory_space<vmem>>, vector<512x128xbf16>
    tpu.vector_store %arg5[%c0_5, %c0_6], %6 {strides = array<i32>} : memref<512x128xbf16, #tpu.memory_space<vmem>>, vector<512x128xbf16>,
    %cst_7 = arith.constant dense<0.000000e+00> : vector<128xf32>
    %8 = vector.multi_reduction <add>, %5, %cst_7 [0] : vector<512x128xf32> to vector<128xf32>
    %9 = vector.shape_cast %8 : vector<128xf32> to vector<1x128xf32>
    %10 = vector.shape_cast %9 : vector<1x128xf32> to vector<1x1x128xf32>
    %c0_8 = arith.constant 0 : index
    %c0_9 = arith.constant 0 : index
    %c0_10 = arith.constant 0 : index
    %11 = vector.load %arg6[%c0_8, %c0_9, %c0_10] : memref<1x1x128xf32, #tpu.memory_space<vmem>>, vector<1x1x128xf32>
    tpu.vector_store %arg6[%c0_8, %c0_9, %c0_10], %10 {strides = array<i32>} : memref<1x1x128xf32, #tpu.memory_space<vmem>>, vector<1x1x128xf32>,
    %12 = arith.mulf %5, %5 : vector<512x128xf32>
    %cst_11 = arith.constant dense<0.000000e+00> : vector<128xf32>
    %13 = vector.multi_reduction <add>, %12, %cst_11 [0] : vector<512x128xf32> to vector<128xf32>
    %14 = vector.shape_cast %13 : vector<128xf32> to vector<1x128xf32>
    %15 = vector.shape_cast %14 : vector<1x128xf32> to vector<1x1x128xf32>
    %c0_12 = arith.constant 0 : index
    %c0_13 = arith.constant 0 : index
    %c0_14 = arith.constant 0 : index
    %16 = vector.load %arg7[%c0_12, %c0_13, %c0_14] : memref<1x1x128xf32, #tpu.memory_space<vmem>>, vector<1x1x128xf32>
    tpu.vector_store %arg7[%c0_12, %c0_13, %c0_14], %15 {strides = array<i32>} : memref<1x1x128xf32, #tpu.memory_space<vmem>>, vector<1x1x128xf32>,
    return
  }
  func.func @transform_0(%arg0: i32, %arg1: i32) -> (i32, i32) {
    %c0_i32 = arith.constant 0 : i32
    %c0_i32_0 = arith.constant 0 : i32
    return %arg0, %c0_i32 : i32, i32
  }
  func.func @transform_1(%arg0: i32, %arg1: i32) -> (i32, i32) {
    %c0_i32 = arith.constant 0 : i32
    %c0_i32_0 = arith.constant 0 : i32
    return %c0_i32, %arg1 : i32, i32
  }
  func.func @transform_2(%arg0: i32, %arg1: i32) -> (i32, i32) {
    %c0_i32 = arith.constant 0 : i32
    %c0_i32_0 = arith.constant 0 : i32
    return %c0_i32, %arg1 : i32, i32
  }
  func.func @transform_3(%arg0: i32, %arg1: i32) -> (i32, i32) {
    %c0_i32 = arith.constant 0 : i32
    return %arg0, %arg1 : i32, i32
  }
  func.func @transform_4(%arg0: i32, %arg1: i32) -> (i32, i32, i32) {
    %c0_i32 = arith.constant 0 : i32
    %c0_i32_0 = arith.constant 0 : i32
    return %arg0, %c0_i32, %arg1 : i32, i32, i32
  }
  func.func @transform_5(%arg0: i32, %arg1: i32) -> (i32, i32, i32) {
    %c0_i32 = arith.constant 0 : i32
    %c0_i32_0 = arith.constant 0 : i32
    return %arg0, %c0_i32, %arg1 : i32, i32, i32
  }
}

</mosaic_0001>

<bundles_post_ra>
// kernel: tpu_custom_call.1
= control target key start
LH: loop header
LB: loop body
LE: loop exit
PB: predicated region body
PF: predicated region fallthrough
CT: control target
= control target key end

     0   :  { %11 = vsyncpa [#allocation3], 0  ;;  %s2573_s0 = inlined_call_operand.hbm [shape: bf16[512,256], index: 0, kind: input, shape index: {}]   ;;  %s2574_s1 = inlined_call_operand.hbm [shape: bf16[256,128], index: 1, kind: input, shape index: {}]   ;;  %s2575_s2 = inlined_call_operand.vmem [shape: f32[1,128], index: 2, kind: input, shape index: {}]   ;;  %s2576_s3 = inlined_call_operand.hbm [shape: bf16[512,128], index: 3, kind: output, shape index: {0}]   ;;  %s2577_s4 = inlined_call_operand.hbm [shape: f32[1,1,128], index: 4, kind: output, shape index: {1}]   ;;  %s2578_s5 = inlined_call_operand.hbm [shape: f32[1,1,128], index: 5, kind: output, shape index: {2}]  }
   0x1   :  { %12 = vsyncpa [#allocation6], 0 }
   0x2   :  { %13 = vsyncpa [#allocation4], 0 }
   0x3   :  { %14 = vsyncpa [#allocation9], 0  ;;  %s2087_s18 = smov [#allocation2]  }
   0x4   :  { %s20_s19 = sshll.u32 %s2087_s18, 4  ;;  %s21_s19 = int_to_ptr.vmem [resolvable:$true] %s20_s19 }
   0x5   :  { %s1987_s20 = scalar_lea.vmem %s21_s19, 8192  ;;  %p1992_p1 = scmp.lt.s32.totalorder %s21_s19, %s21_s19 }
   0x6   :  { %p1988_p0 = scmp.ne.s32.totalorder %s21_s19, %s1987_s20  ;;  %p1993_p2 = scmp.lt.s32.totalorder %s1987_s20, %s1987_s20 }
   0x8   :  { %p1994_p3 = por %p1993_p2, %p1992_p1 }
   0xa   :  { %p1995_p4 = pnand %p1994_p3, %p1988_p0 }
   0xc   :  { %1998 = shalt.err (!%p1995_p4)
}
   0xd   :  { %s2088_s21 = smov 128   ;;  %s2089_s22 = smov 8  }
   0xe   :  { %26 = dma.hbm_to_vmem [thread:$0]  %s2573_s0, 8192, %s21_s19, [#allocation3], %s2088_s21, %s2088_s21, %s2089_s22  }
   0xf   :  { %s2090_s25 = smov [#allocation5]  }
  0x10   :  { %s32_s26 = sshll.u32 %s2090_s25, 4  ;;  %s33_s26 = int_to_ptr.vmem [resolvable:$true] %s32_s26 }
  0x11   :  { %s2007_s27 = scalar_lea.vmem %s33_s26, 2048  ;;  %p2012_p6 = scmp.lt.s32.totalorder %s33_s26, %s33_s26 }
  0x12   :  { %p2008_p5 = scmp.ne.s32.totalorder %s33_s26, %s2007_s27  ;;  %p2013_p7 = scmp.lt.s32.totalorder %s2007_s27, %s2007_s27 }
  0x14   :  { %p2014_p8 = por %p2013_p7, %p2012_p6 }
  0x16   :  { %p2015_p9 = pnand %p2014_p8, %p2008_p5 }
  0x18   :  { %2018 = shalt.err (!%p2015_p9)
}
  0x19   :  { %s2091_s28 = smov 64   ;;  %s2092_s29 = smov 4  }
  0x1a   :  { %38 = dma.hbm_to_vmem [thread:$0]  %s2574_s1, 2048, %s33_s26, [#allocation6], %s2091_s28, %s2091_s28, %s2092_s29  }
  0x1b   :  { %2079 = dma.done.wait [#allocation3], 8192  }
  0x1c   :  { %2080 = vsyncadd [#allocation3], 4294959104 }
  0x1d   :  { %2081 = dma.done.wait [#allocation6], 2048  }
  0x1e   :  { %2082 = vsyncadd [#allocation6], 4294965248  ;;  %v2093_v0 = vmov 0   ;;  %v1867_v1 = vld [vmem:[#allocation5 + $0x38] sm:$0xff]   ;;  %v1868_v2 = vld [vmem:[#allocation5 + $0x30] sm:$0xff]  }
  0x1f   :  { %567 = vmatprep.subr.bf16.mxu0 %v2093_v0  ;;  %1825 = vmatprep.subr.bf16.mxu1 %v2093_v0  ;;  %v1869_v3 = vld [vmem:[#allocation5 + $0x28] sm:$0xff]   ;;  %v1870_v4 = vld [vmem:[#allocation5 + $0x20] sm:$0xff]   ;;  %v1871_v5 = vld [vmem:[#allocation5 + $0x18] sm:$0xff]  }
  0x20   :  { %568 = vmatpush1.bf16.msra.mxu0 %v1867_v1  ;;  %1841 = vmatpush1.bf16.msra.mxu1 %v1867_v1  ;;  %v1885_v6 = vld [vmem:[#allocation2 + $0x4] ss:$8 sps:$4 sm:$0xff]   ;;  %v1872_v7 = vld [vmem:[#allocation5 + $0x10] sm:$0xff]   ;;  %v1875_v11 = vld [vmem:[#allocation5 + $0x78] sm:$0xff]  }
  0x21   :  { %569 = vmatprep.subr.bf16.mxu0 %v2093_v0  ;;  %1826 = vmatprep.subr.bf16.mxu1 %v2093_v0  ;;  %v1873_v8 = vld [vmem:[#allocation5 + $0x8] sm:$0xff]   ;;  %v1874_v9 = vld [vmem:[#allocation5] sm:$0xff]   ;;  %v1876_v12 = vld [vmem:[#allocation5 + $0x70] sm:$0xff]  }
  0x22   :  { %599 = vmatprep.mubr.bf16.mxu0 %v1885_v6  ;;  %v1909_v10 = vld [vmem:[#allocation2 + $0x104] ss:$8 sps:$4 sm:$0xff]   ;;  %v1879_v15 = vld [vmem:[#allocation5 + $0x58] sm:$0xff]   ;;  %v1880_v16 = vld [vmem:[#allocation5 + $0x50] sm:$0xff]  }
  0x23   :  { %727 = vmatprep.mubr.bf16.mxu1 %v1909_v10  ;;  %v1877_v13 = vld [vmem:[#allocation5 + $0x68] sm:$0xff]   ;;  %v1878_v14 = vld [vmem:[#allocation5 + $0x60] sm:$0xff]   ;;  %v1886_v21 = vld [vmem:[#allocation2 + $0x14] ss:$8 sps:$4 sm:$0xff]  }
  0x24   :  { %570 = vmatpush1.bf16.msra.mxu0 %v1868_v2  ;;  %1842 = vmatpush1.bf16.msra.mxu1 %v1868_v2  ;;  %v1881_v17 = vld [vmem:[#allocation5 + $0x48] sm:$0xff]   ;;  %v1882_v18 = vld [vmem:[#allocation5 + $0x40] sm:$0xff]   ;;  %v1913_v22 = vld [vmem:[#allocation2 + $0x114] ss:$8 sps:$4 sm:$0xff]  }
  0x25   :  { %571 = vmatprep.subr.bf16.mxu0 %v2093_v0  ;;  %1827 = vmatprep.subr.bf16.mxu1 %v2093_v0  ;;  %v1883_v19 = vld [vmem:[#allocation2] ss:$8 sps:$4 sm:$0xff]   ;;  %v1888_v23 = vld [vmem:[#allocation2 + $0x10] ss:$8 sps:$4 sm:$0xff]   ;;  %v1889_v25 = vld [vmem:[#allocation2 + $0x24] ss:$8 sps:$4 sm:$0xff]  }
  0x26   :  { %v1907_v20 = vld [vmem:[#allocation2 + $0x100] ss:$8 sps:$4 sm:$0xff]   ;;  %v1915_v24 = vld [vmem:[#allocation2 + $0x110] ss:$8 sps:$4 sm:$0xff]   ;;  %v1919_v26 = vld [vmem:[#allocation2 + $0x124] ss:$8 sps:$4 sm:$0xff]  }
  0x27   :  { %v1891_v27 = vld [vmem:[#allocation2 + $0x20] ss:$8 sps:$4 sm:$0xff]   ;;  %v1892_v29 = vld [vmem:[#allocation2 + $0x34] ss:$8 sps:$4 sm:$0xff]   ;;  %v1894_v31 = vld [vmem:[#allocation2 + $0x30] ss:$8 sps:$4 sm:$0xff]  }
  0x28   :  { %572 = vmatpush1.bf16.msra.mxu0 %v1869_v3  ;;  %1843 = vmatpush1.bf16.msra.mxu1 %v1869_v3  ;;  %v1921_v28 = vld [vmem:[#allocation2 + $0x120] ss:$8 sps:$4 sm:$0xff]   ;;  %v1925_v30 = vld [vmem:[#allocation2 + $0x134] ss:$8 sps:$4 sm:$0xff]   ;;  %v1927_v32 = vld [vmem:[#allocation2 + $0x130] ss:$8 sps:$4 sm:$0xff]  }
  0x29   :  { %573 = vmatprep.subr.bf16.mxu0 %v2093_v0  ;;  %1828 = vmatprep.subr.bf16.mxu1 %v2093_v0  ;;  %v1895_v33 = vld [vmem:[#allocation2 + $0x44] ss:$8 sps:$4 sm:$0xff]   ;;  %v1897_v35 = vld [vmem:[#allocation2 + $0x40] ss:$8 sps:$4 sm:$0xff]   ;;  %v1898_v37 = vld [vmem:[#allocation2 + $0x54] ss:$8 sps:$4 sm:$0xff]  }
  0x2a   :  { %v1931_v34 = vld [vmem:[#allocation2 + $0x144] ss:$8 sps:$4 sm:$0xff]   ;;  %v1933_v36 = vld [vmem:[#allocation2 + $0x140] ss:$8 sps:$4 sm:$0xff]   ;;  %v1937_v38 = vld [vmem:[#allocation2 + $0x154] ss:$8 sps:$4 sm:$0xff]  }
  0x2b   :  { %v1900_v39 = vld [vmem:[#allocation2 + $0x50] ss:$8 sps:$4 sm:$0xff]   ;;  %v1901_v41 = vld [vmem:[#allocation2 + $0x64] ss:$8 sps:$4 sm:$0xff]   ;;  %v1903_v43 = vld [vmem:[#allocation2 + $0x60] ss:$8 sps:$4 sm:$0xff]  }
  0x2c   :  { %574 = vmatpush1.bf16.msra.mxu0 %v1870_v4  ;;  %1844 = vmatpush1.bf16.msra.mxu1 %v1870_v4  ;;  %v1939_v40 = vld [vmem:[#allocation2 + $0x150] ss:$8 sps:$4 sm:$0xff]   ;;  %v1943_v42 = vld [vmem:[#allocation2 + $0x164] ss:$8 sps:$4 sm:$0xff]   ;;  %v1945_v44 = vld [vmem:[#allocation2 + $0x160] ss:$8 sps:$4 sm:$0xff]  }
  0x2d   :  { %575 = vmatprep.subr.bf16.mxu0 %v2093_v0  ;;  %1829 = vmatprep.subr.bf16.mxu1 %v2093_v0  ;;  %v1904_v45 = vld [vmem:[#allocation2 + $0x74] ss:$8 sps:$4 sm:$0xff]   ;;  %v1906_v47 = vld [vmem:[#allocation2 + $0x70] ss:$8 sps:$4 sm:$0xff]   ;;  %v1910_v49 = vld [vmem:[#allocation2 + $0x84] ss:$8 sps:$4 sm:$0xff]  }
  0x2e   :  { %v1949_v46 = vld [vmem:[#allocation2 + $0x174] ss:$8 sps:$4 sm:$0xff]   ;;  %v1951_v48 = vld [vmem:[#allocation2 + $0x170] ss:$8 sps:$4 sm:$0xff]   ;;  %v1955_v50 = vld [vmem:[#allocation2 + $0x184] ss:$8 sps:$4 sm:$0xff]  }
  0x2f   :  { %v1912_v51 = vld [vmem:[#allocation2 + $0x80] ss:$8 sps:$4 sm:$0xff]   ;;  %v1916_v53 = vld [vmem:[#allocation2 + $0x94] ss:$8 sps:$4 sm:$0xff]   ;;  %v1918_v55 = vld [vmem:[#allocation2 + $0x90] ss:$8 sps:$4 sm:$0xff]  }
  0x30   :  { %576 = vmatpush1.bf16.msra.mxu0 %v1871_v5  ;;  %1845 = vmatpush1.bf16.msra.mxu1 %v1871_v5  ;;  %v1957_v52 = vld [vmem:[#allocation2 + $0x180] ss:$8 sps:$4 sm:$0xff]   ;;  %v1958_v54 = vld [vmem:[#allocation2 + $0x194] ss:$8 sps:$4 sm:$0xff]   ;;  %v1960_v56 = vld [vmem:[#allocation2 + $0x190] ss:$8 sps:$4 sm:$0xff]  }
  0x31   :  { %577 = vmatprep.subr.bf16.mxu0 %v2093_v0  ;;  %1830 = vmatprep.subr.bf16.mxu1 %v2093_v0  ;;  %v1922_v57 = vld [vmem:[#allocation2 + $0xa4] ss:$8 sps:$4 sm:$0xff]   ;;  %v1924_v59 = vld [vmem:[#allocation2 + $0xa0] ss:$8 sps:$4 sm:$0xff]   ;;  %v1928_v61 = vld [vmem:[#allocation2 + $0xb4] ss:$8 sps:$4 sm:$0xff]  }
  0x32   :  { %v1961_v58 = vld [vmem:[#allocation2 + $0x1a4] ss:$8 sps:$4 sm:$0xff]   ;;  %v1963_v60 = vld [vmem:[#allocation2 + $0x1a0] ss:$8 sps:$4 sm:$0xff]   ;;  %v1964_v62 = vld [vmem:[#allocation2 + $0x1b4] ss:$8 sps:$4 sm:$0xff]  }
  0x33   :  { %v1930_v63 = vld [vmem:[#allocation2 + $0xb0] ss:$8 sps:$4 sm:$0xff]   ;;  %v1934_v1 = vld [vmem:[#allocation2 + $0xc4] ss:$8 sps:$4 sm:$0xff]   ;;  %v1936_v3 = vld [vmem:[#allocation2 + $0xc0] ss:$8 sps:$4 sm:$0xff]  }
  0x34   :  { %578 = vmatpush1.bf16.msra.mxu0 %v1872_v7  ;;  %1846 = vmatpush1.bf16.msra.mxu1 %v1872_v7  ;;  %v1967_v2 = vld [vmem:[#allocation2 + $0x1c4] ss:$8 sps:$4 sm:$0xff]   ;;  %v1969_v4 = vld [vmem:[#allocation2 + $0x1c0] ss:$8 sps:$4 sm:$0xff]   ;;  %v1940_v5 = vld [vmem:[#allocation2 + $0xd4] ss:$8 sps:$4 sm:$0xff]  }
  0x35   :  { %579 = vmatprep.subr.bf16.mxu0 %v2093_v0  ;;  %1831 = vmatprep.subr.bf16.mxu1 %v2093_v0  ;;  %v1970_v6 = vld [vmem:[#allocation2 + $0x1d4] ss:$8 sps:$4 sm:$0xff]   ;;  %v1942_v7 = vld [vmem:[#allocation2 + $0xd0] ss:$8 sps:$4 sm:$0xff]   ;;  %v1973_v10 = vld [vmem:[#allocation2 + $0x1e4] ss:$8 sps:$4 sm:$0xff]  }
  0x38   :  { %580 = vmatpush1.bf16.msra.mxu0 %v1873_v8  ;;  %1847 = vmatpush1.bf16.msra.mxu1 %v1873_v8  ;;  %v1972_v8 = vld [vmem:[#allocation2 + $0x1d0] ss:$8 sps:$4 sm:$0xff]  }
  0x39   :  { %581 = vmatprep.subr.bf16.mxu0 %v2093_v0  ;;  %1832 = vmatprep.subr.bf16.mxu1 %v2093_v0 }
  0x3c   :  { %582 = vmatpush1.bf16.msra.mxu0 %v1874_v9  ;;  %1848 = vmatpush1.bf16.msra.mxu1 %v1874_v9  ;;  %v1946_v9 = vld [vmem:[#allocation2 + $0xe4] ss:$8 sps:$4 sm:$0xff]  }
  0x3d   :  { %583 = vmatprep.subr.bf16.mxu0 %v2093_v0  ;;  %1833 = vmatprep.subr.bf16.mxu1 %v2093_v0 }
  0x40   :  { %584 = vmatpush2.bf16.msra.mxu0 %v1875_v11  ;;  %1849 = vmatpush2.bf16.msra.mxu1 %v1875_v11  ;;  %v1948_v11 = vld [vmem:[#allocation2 + $0xe0] ss:$8 sps:$4 sm:$0xff]  }
  0x41   :  { %585 = vmatprep.subr.bf16.mxu0 %v2093_v0  ;;  %1834 = vmatprep.subr.bf16.mxu1 %v2093_v0 }
  0x44   :  { %586 = vmatpush2.bf16.msra.mxu0 %v1876_v12  ;;  %1850 = vmatpush2.bf16.msra.mxu1 %v1876_v12  ;;  %v1975_v12 = vld [vmem:[#allocation2 + $0x1e0] ss:$8 sps:$4 sm:$0xff]  }
  0x45   :  { %587 = vmatprep.subr.bf16.mxu0 %v2093_v0  ;;  %1835 = vmatprep.subr.bf16.mxu1 %v2093_v0 }
  0x48   :  { %588 = vmatpush2.bf16.msra.mxu0 %v1877_v13  ;;  %1851 = vmatpush2.bf16.msra.mxu1 %v1877_v13  ;;  %v1952_v13 = vld [vmem:[#allocation2 + $0xf4] ss:$8 sps:$4 sm:$0xff]  }
  0x49   :  { %589 = vmatprep.subr.bf16.mxu0 %v2093_v0  ;;  %1836 = vmatprep.subr.bf16.mxu1 %v2093_v0 }
  0x4c   :  { %590 = vmatpush2.bf16.msra.mxu0 %v1878_v14  ;;  %1852 = vmatpush2.bf16.msra.mxu1 %v1878_v14  ;;  %v1976_v14 = vld [vmem:[#allocation2 + $0x1f4] ss:$8 sps:$4 sm:$0xff]  }
  0x4d   :  { %591 = vmatprep.subr.bf16.mxu0 %v2093_v0  ;;  %1837 = vmatprep.subr.bf16.mxu1 %v2093_v0 }
  0x50   :  { %592 = vmatpush2.bf16.msra.mxu0 %v1879_v15  ;;  %1853 = vmatpush2.bf16.msra.mxu1 %v1879_v15  ;;  %v1954_v15 = vld [vmem:[#allocation2 + $0xf0] ss:$8 sps:$4 sm:$0xff]  }
  0x51   :  { %593 = vmatprep.subr.bf16.mxu0 %v2093_v0  ;;  %1838 = vmatprep.subr.bf16.mxu1 %v2093_v0 }
  0x54   :  { %594 = vmatpush2.bf16.msra.mxu0 %v1880_v16  ;;  %1854 = vmatpush2.bf16.msra.mxu1 %v1880_v16  ;;  %v1978_v16 = vld [vmem:[#allocation2 + $0x1f0] ss:$8 sps:$4 sm:$0xff]  }
  0x55   :  { %595 = vmatprep.subr.bf16.mxu0 %v2093_v0  ;;  %1839 = vmatprep.subr.bf16.mxu1 %v2093_v0 }
  0x58   :  { %596 = vmatpush2.bf16.msra.mxu0 %v1881_v17  ;;  %1855 = vmatpush2.bf16.msra.mxu1 %v1881_v17 }
  0x59   :  { %597 = vmatprep.subr.bf16.mxu0 %v2093_v0  ;;  %1840 = vmatprep.subr.bf16.mxu1 %v2093_v0  ;;  %v1966_v0 = vld [vmem:[#allocation2 + $0x1b0] ss:$8 sps:$4 sm:$0xff]  }
  0x5c   :  { %598 = vmatpush2.bf16.msra.mxu0 %v1882_v18  ;;  %1856 = vmatpush2.bf16.msra.mxu1 %v1882_v18 }
  0x5f   :  { %600 = vmatmul.mubr.bf16.vlgmr.msra.gmra.mxu0 %v1883_v19  ;;  %728 = vmatmul.mubr.bf16.vlgmr.msra.gmra.mxu1 %v1907_v20  ;;  %v2171_v19 = vld [vmem:[%s2575_s2] ss:$0 sm:$0xff]  ;;  %s2094_s2 = smov [#allocation7]  }
  0x60   :  { %607 = vmatprep.mubr.bf16.mxu0 %v1886_v21  ;;  %735 = vmatprep.mubr.bf16.mxu1 %v1913_v22  ;;  %s1385_s7 = sshll.u32 %s2094_s2, 4  ;;  %s1386_s7 = int_to_ptr.vmem [resolvable:$true] %s1385_s7 }
  0x61   :  { %s2019_s8 = scalar_lea.vmem %s1386_s7, 4096  ;;  %p2024_p11 = scmp.lt.s32.totalorder %s1386_s7, %s1386_s7 }
  0x62   :  { %p2020_p10 = scmp.ne.s32.totalorder %s1386_s7, %s2019_s8  ;;  %p2025_p12 = scmp.lt.s32.totalorder %s2019_s8, %s2019_s8 }
  0x64   :  { %p2026_p13 = por %p2025_p12, %p2024_p11 }
  0x66   :  { %p2027_p0 = pnand %p2026_p13, %p2020_p10 }
  0x67   :  { %608 = vmatmul.mubr.bf16.gmra.mxu0 %v1888_v23  ;;  %736 = vmatmul.mubr.bf16.gmra.mxu1 %v1915_v24 }
  0x68   :  { %615 = vmatprep.mubr.bf16.mxu0 %v1889_v25  ;;  %743 = vmatprep.mubr.bf16.mxu1 %v1919_v26 }
  0x6f   :  { %616 = vmatmul.mubr.bf16.gmra.mxu0 %v1891_v27  ;;  %744 = vmatmul.mubr.bf16.gmra.mxu1 %v1921_v28 }
  0x70   :  { %623 = vmatprep.mubr.bf16.mxu0 %v1892_v29  ;;  %751 = vmatprep.mubr.bf16.mxu1 %v1925_v30 }
  0x77   :  { %624 = vmatmul.mubr.bf16.gmra.mxu0 %v1894_v31  ;;  %752 = vmatmul.mubr.bf16.gmra.mxu1 %v1927_v32 }
  0x78   :  { %631 = vmatprep.mubr.bf16.mxu0 %v1895_v33  ;;  %759 = vmatprep.mubr.bf16.mxu1 %v1931_v34 }
  0x7f   :  { %632 = vmatmul.mubr.bf16.gmra.mxu0 %v1897_v35  ;;  %760 = vmatmul.mubr.bf16.gmra.mxu1 %v1933_v36 }
  0x80   :  { %639 = vmatprep.mubr.bf16.mxu0 %v1898_v37  ;;  %767 = vmatprep.mubr.bf16.mxu1 %v1937_v38 }
  0x87   :  { %640 = vmatmul.mubr.bf16.gmra.mxu0 %v1900_v39  ;;  %768 = vmatmul.mubr.bf16.gmra.mxu1 %v1939_v40 }
  0x88   :  { %647 = vmatprep.mubr.bf16.mxu0 %v1901_v41  ;;  %775 = vmatprep.mubr.bf16.mxu1 %v1943_v42 }
  0x8f   :  { %648 = vmatmul.mubr.bf16.gmra.mxu0 %v1903_v43  ;;  %776 = vmatmul.mubr.bf16.gmra.mxu1 %v1945_v44 }
  0x90   :  { %655 = vmatprep.mubr.bf16.mxu0 %v1904_v45  ;;  %783 = vmatprep.mubr.bf16.mxu1 %v1949_v46 }
  0x97   :  { %656 = vmatmul.mubr.bf16.gmra.mxu0 %v1906_v47  ;;  %784 = vmatmul.mubr.bf16.gmra.mxu1 %v1951_v48 }
  0x98   :  { %663 = vmatprep.mubr.bf16.mxu0 %v1910_v49  ;;  %791 = vmatprep.mubr.bf16.mxu1 %v1955_v50 }
  0x9f   :  { %664 = vmatmul.mubr.bf16.gmra.mxu0 %v1912_v51  ;;  %792 = vmatmul.mubr.bf16.gmra.mxu1 %v1957_v52 }
  0xa0   :  { %671 = vmatprep.mubr.bf16.mxu0 %v1916_v53  ;;  %799 = vmatprep.mubr.bf16.mxu1 %v1958_v54 }
  0xa7   :  { %672 = vmatmul.mubr.bf16.gmra.mxu0 %v1918_v55  ;;  %800 = vmatmul.mubr.bf16.gmra.mxu1 %v1960_v56 }
  0xa8   :  { %679 = vmatprep.mubr.bf16.mxu0 %v1922_v57  ;;  %807 = vmatprep.mubr.bf16.mxu1 %v1961_v58 }
  0xaf   :  { %680 = vmatmul.mubr.bf16.gmra.mxu0 %v1924_v59  ;;  %808 = vmatmul.mubr.bf16.gmra.mxu1 %v1963_v60 }
  0xb0   :  { %687 = vmatprep.mubr.bf16.mxu0 %v1928_v61  ;;  %815 = vmatprep.mubr.bf16.mxu1 %v1964_v62 }
  0xb7   :  { %688 = vmatmul.mubr.bf16.gmra.mxu0 %v1930_v63  ;;  %816 = vmatmul.mubr.bf16.gmra.mxu1 %v1966_v0 }
  0xb8   :  { %695 = vmatprep.mubr.bf16.mxu0 %v1934_v1  ;;  %823 = vmatprep.mubr.bf16.mxu1 %v1967_v2 }
  0xbf   :  { %696 = vmatmul.mubr.bf16.gmra.mxu0 %v1936_v3  ;;  %824 = vmatmul.mubr.bf16.gmra.mxu1 %v1969_v4 }
  0xc0   :  { %703 = vmatprep.mubr.bf16.mxu0 %v1940_v5  ;;  %831 = vmatprep.mubr.bf16.mxu1 %v1970_v6 }
  0xc7   :  { %704 = vmatmul.mubr.bf16.gmra.mxu0 %v1942_v7  ;;  %832 = vmatmul.mubr.bf16.gmra.mxu1 %v1972_v8 }
  0xc8   :  { %711 = vmatprep.mubr.bf16.mxu0 %v1946_v9  ;;  %839 = vmatprep.mubr.bf16.mxu1 %v1973_v10 }
  0xcf   :  { %712 = vmatmul.mubr.bf16.gmra.mxu0 %v1948_v11  ;;  %840 = vmatmul.mubr.bf16.gmra.mxu1 %v1975_v12 }
  0xd0   :  { %719 = vmatprep.mubr.bf16.mxu0 %v1952_v13  ;;  %847 = vmatprep.mubr.bf16.mxu1 %v1976_v14 }
  0xd7   :  { %720 = vmatmul.mubr.bf16.gmra.mxu0 %v1954_v15  ;;  %848 = vmatmul.mubr.bf16.gmra.mxu1 %v1978_v16 }
 0x11f   :  { %v601_v17 = vpop.f32.mrf.mxu0  ;;  %v729_v18 = vpop.f32.mrf.mxu1 }
 0x120   :  { %v2174_v22 = vadd.f32 %v2171_v19, %v729_v18  ;;  %v2177_v25 = vadd.f32 %v2171_v19, %v601_v17 }
 0x121   :  { %v603_v20 = vpop.f32.mrf.mxu0  ;;  %v731_v21 = vpop.f32.mrf.mxu1 }
 0x123   :  { %v604_v23 = vpop.f32.mrf.mxu0  ;;  %v732_v24 = vpop.f32.mrf.mxu1 }
 0x124   :  { %v2180_v26 = vadd.f32 %v2171_v19, %v604_v23  ;;  %v2183_v27 = vadd.f32 %v2171_v19, %v732_v24 }
 0x125   :  { %v606_v28 = vpop.f32.mrf.mxu0  ;;  %v734_v29 = vpop.f32.mrf.mxu1 }
 0x126   :  { %v1637_v30 = vpack.c.bf16 %v2180_v26, %v2177_v25  ;;  %v1717_v31 = vpack.c.bf16 %v2183_v27, %v2174_v22 }
 0x127   :  { %v609_v32 = vpop.f32.mrf.mxu0  ;;  %v737_v33 = vpop.f32.mrf.mxu1 }
 0x128   :  { %1638 = vst [vmem:[#allocation7] sm:$0xff] %v1637_v30   ;;  %1809 = vst [vmem:[#allocation7 + $0x80] sm:$0xff] %v1717_v31   ;;  %v2190_v36 = vadd.f32 %v2171_v19, %v737_v33  ;;  %v2193_v39 = vadd.f32 %v2171_v19, %v609_v32 }
 0x129   :  { %v611_v34 = vpop.f32.mrf.mxu0  ;;  %v739_v35 = vpop.f32.mrf.mxu1 }
 0x12b   :  { %v612_v37 = vpop.f32.mrf.mxu0  ;;  %v740_v38 = vpop.f32.mrf.mxu1 }
 0x12c   :  { %v2196_v40 = vadd.f32 %v2171_v19, %v612_v37  ;;  %v2199_v41 = vadd.f32 %v2171_v19, %v740_v38 }
 0x12d   :  { %v614_v42 = vpop.f32.mrf.mxu0  ;;  %v742_v43 = vpop.f32.mrf.mxu1 }
 0x12e   :  { %v1642_v44 = vpack.c.bf16 %v2196_v40, %v2193_v39  ;;  %v1722_v45 = vpack.c.bf16 %v2199_v41, %v2190_v36 }
 0x12f   :  { %v617_v46 = vpop.f32.mrf.mxu0  ;;  %v745_v47 = vpop.f32.mrf.mxu1 }
 0x130   :  { %1794 = vst [vmem:[#allocation7 + $0x8] sm:$0xff] %v1642_v44   ;;  %1810 = vst [vmem:[#allocation7 + $0x88] sm:$0xff] %v1722_v45   ;;  %v2206_v50 = vadd.f32 %v2171_v19, %v745_v47  ;;  %v2209_v53 = vadd.f32 %v2171_v19, %v617_v46 }
 0x131   :  { %v619_v48 = vpop.f32.mrf.mxu0  ;;  %v747_v49 = vpop.f32.mrf.mxu1 }
 0x133   :  { %v620_v51 = vpop.f32.mrf.mxu0  ;;  %v748_v52 = vpop.f32.mrf.mxu1 }
 0x134   :  { %v2212_v54 = vadd.f32 %v2171_v19, %v620_v51  ;;  %v2215_v55 = vadd.f32 %v2171_v19, %v748_v52 }
 0x135   :  { %v622_v56 = vpop.f32.mrf.mxu0  ;;  %v750_v57 = vpop.f32.mrf.mxu1 }
 0x136   :  { %v1647_v58 = vpack.c.bf16 %v2212_v54, %v2209_v53  ;;  %v1727_v59 = vpack.c.bf16 %v2215_v55, %v2206_v50 }
 0x137   :  { %v625_v60 = vpop.f32.mrf.mxu0  ;;  %v753_v61 = vpop.f32.mrf.mxu1 }
 0x138   :  { %1795 = vst [vmem:[#allocation7 + $0x10] sm:$0xff] %v1647_v58   ;;  %1811 = vst [vmem:[#allocation7 + $0x90] sm:$0xff] %v1727_v59   ;;  %v2222_v0 = vadd.f32 %v2171_v19, %v753_v61  ;;  %v2225_v3 = vadd.f32 %v2171_v19, %v625_v60 }
 0x139   :  { %v627_v62 = vpop.f32.mrf.mxu0  ;;  %v755_v63 = vpop.f32.mrf.mxu1 }
 0x13b   :  { %v628_v1 = vpop.f32.mrf.mxu0  ;;  %v756_v2 = vpop.f32.mrf.mxu1 }
 0x13c   :  { %v2228_v4 = vadd.f32 %v2171_v19, %v628_v1  ;;  %v2231_v5 = vadd.f32 %v2171_v19, %v756_v2 }
 0x13d   :  { %v630_v6 = vpop.f32.mrf.mxu0  ;;  %v758_v7 = vpop.f32.mrf.mxu1 }
 0x13e   :  { %v1652_v8 = vpack.c.bf16 %v2228_v4, %v2225_v3  ;;  %v1732_v9 = vpack.c.bf16 %v2231_v5, %v2222_v0 }
 0x13f   :  { %v633_v10 = vpop.f32.mrf.mxu0  ;;  %v761_v11 = vpop.f32.mrf.mxu1 }
 0x140   :  { %1796 = vst [vmem:[#allocation7 + $0x18] sm:$0xff] %v1652_v8   ;;  %1812 = vst [vmem:[#allocation7 + $0x98] sm:$0xff] %v1732_v9   ;;  %v2238_v14 = vadd.f32 %v2171_v19, %v761_v11  ;;  %v2241_v17 = vadd.f32 %v2171_v19, %v633_v10 }
 0x141   :  { %v635_v12 = vpop.f32.mrf.mxu0  ;;  %v763_v13 = vpop.f32.mrf.mxu1 }
 0x143   :  { %v636_v15 = vpop.f32.mrf.mxu0  ;;  %v764_v16 = vpop.f32.mrf.mxu1 }
 0x144   :  { %v2244_v18 = vadd.f32 %v2171_v19, %v636_v15  ;;  %v2247_v20 = vadd.f32 %v2171_v19, %v764_v16 }
 0x145   :  { %v638_v21 = vpop.f32.mrf.mxu0  ;;  %v766_v23 = vpop.f32.mrf.mxu1 }
 0x146   :  { %v1657_v24 = vpack.c.bf16 %v2244_v18, %v2241_v17  ;;  %v1737_v28 = vpack.c.bf16 %v2247_v20, %v2238_v14 }
 0x147   :  { %v641_v29 = vpop.f32.mrf.mxu0  ;;  %v769_v30 = vpop.f32.mrf.mxu1 }
 0x148   :  { %1797 = vst [vmem:[#allocation7 + $0x20] sm:$0xff] %v1657_v24   ;;  %1813 = vst [vmem:[#allocation7 + $0xa0] sm:$0xff] %v1737_v28   ;;  %v2254_v33 = vadd.f32 %v2171_v19, %v769_v30  ;;  %v2257_v37 = vadd.f32 %v2171_v19, %v641_v29  ;;  %v1247_v28 = vmul.f32 %v2180_v26, %v2180_v26 }
 0x149   :  { %v643_v31 = vpop.f32.mrf.mxu0  ;;  %v771_v32 = vpop.f32.mrf.mxu1 }
 0x14a   :  { %v1246_v31 = vmul.f32 %v2177_v25, %v2177_v25  ;;  %v1248_v32 = vmul.f32 %v2193_v39, %v2193_v39 }
 0x14b   :  { %v644_v34 = vpop.f32.mrf.mxu0  ;;  %v772_v35 = vpop.f32.mrf.mxu1 }
 0x14c   :  { %v2260_v38 = vadd.f32 %v2171_v19, %v644_v34  ;;  %v2263_v42 = vadd.f32 %v2171_v19, %v772_v35 }
 0x14d   :  { %v646_v43 = vpop.f32.mrf.mxu0  ;;  %v774_v44 = vpop.f32.mrf.mxu1 }
 0x14e   :  { %v1662_v45 = vpack.c.bf16 %v2260_v38, %v2257_v37  ;;  %v1742_v46 = vpack.c.bf16 %v2263_v42, %v2254_v33  ;;  %v1176_v43 = vadd.f32 %v2180_v26, %v2177_v25  ;;  %v1250_v26 = vmul.f32 %v2209_v53, %v2209_v53 }
 0x14f   :  { %v649_v47 = vpop.f32.mrf.mxu0  ;;  %v777_v48 = vpop.f32.mrf.mxu1 }
 0x150   :  { %1798 = vst [vmem:[#allocation7 + $0x28] sm:$0xff] %v1662_v45   ;;  %1814 = vst [vmem:[#allocation7 + $0xa8] sm:$0xff] %v1742_v46   ;;  %v2270_v52 = vadd.f32 %v2171_v19, %v777_v48  ;;  %v2273_v58 = vadd.f32 %v2171_v19, %v649_v47  ;;  %v1310_v45 = vadd.f32 %v1247_v28, %v1246_v31 }
 0x151   :  { %v651_v49 = vpop.f32.mrf.mxu0  ;;  %v779_v51 = vpop.f32.mrf.mxu1  ;;  %v1249_v46 = vmul.f32 %v2196_v40, %v2196_v40 }
 0x152   :  { %v1177_v49 = vadd.f32 %v1176_v43, %v2193_v39  ;;  %v1311_v25 = vadd.f32 %v1310_v45, %v1248_v32  ;;  %v1254_v43 = vmul.f32 %v2241_v17, %v2241_v17 }
 0x153   :  { %v652_v56 = vpop.f32.mrf.mxu0  ;;  %v780_v57 = vpop.f32.mrf.mxu1 }
 0x154   :  { %v2276_v59 = vadd.f32 %v2171_v19, %v652_v56  ;;  %v2279_v60 = vadd.f32 %v2171_v19, %v780_v57 }
 0x155   :  { %v654_v61 = vpop.f32.mrf.mxu0  ;;  %v782_v62 = vpop.f32.mrf.mxu1 }
 0x156   :  { %v1667_v63 = vpack.c.bf16 %v2276_v59, %v2273_v58  ;;  %v1747_v1 = vpack.c.bf16 %v2279_v60, %v2270_v52 }
 0x157   :  { %v657_v2 = vpop.f32.mrf.mxu0  ;;  %v785_v6 = vpop.f32.mrf.mxu1 }
 0x158   :  { %1799 = vst [vmem:[#allocation7 + $0x30] sm:$0xff] %v1667_v63   ;;  %1815 = vst [vmem:[#allocation7 + $0xb0] sm:$0xff] %v1747_v1   ;;  %v2286_v9 = vadd.f32 %v2171_v19, %v785_v6  ;;  %v2289_v12 = vadd.f32 %v2171_v19, %v657_v2  ;;  %v1178_v63 = vadd.f32 %v1177_v49, %v2196_v40 }
 0x159   :  { %v659_v7 = vpop.f32.mrf.mxu0  ;;  %v787_v8 = vpop.f32.mrf.mxu1  ;;  %v1312_v2 = vadd.f32 %v1311_v25, %v1249_v46  ;;  %v1251_v6 = vmul.f32 %v2212_v54, %v2212_v54  ;;  %v1252_v40 = vmul.f32 %v2225_v3, %v2225_v3  ;;  %v1255_v25 = vmul.f32 %v2244_v18, %v2244_v18 }
 0x15b   :  { %v660_v10 = vpop.f32.mrf.mxu0  ;;  %v788_v11 = vpop.f32.mrf.mxu1 }
 0x15c   :  { %v2292_v13 = vadd.f32 %v2171_v19, %v660_v10  ;;  %v2295_v15 = vadd.f32 %v2171_v19, %v788_v11  ;;  %v1179_v10 = vadd.f32 %v1178_v63, %v2209_v53  ;;  %v1313_v11 = vadd.f32 %v1312_v2, %v1250_v26 }
 0x15d   :  { %v662_v16 = vpop.f32.mrf.mxu0  ;;  %v790_v21 = vpop.f32.mrf.mxu1 }
 0x15e   :  { %v1672_v23 = vpack.c.bf16 %v2292_v13, %v2289_v12  ;;  %v1752_v24 = vpack.c.bf16 %v2295_v15, %v2286_v9  ;;  %v1314_v28 = vadd.f32 %v1313_v11, %v1251_v6 }
 0x15f   :  { %v665_v29 = vpop.f32.mrf.mxu0  ;;  %v793_v30 = vpop.f32.mrf.mxu1 }
 0x160   :  { %1800 = vst [vmem:[#allocation7 + $0x38] sm:$0xff] %v1672_v23   ;;  %1816 = vst [vmem:[#allocation7 + $0xb8] sm:$0xff] %v1752_v24   ;;  %v2310_v44 = vadd.f32 %v2171_v19, %v793_v30  ;;  %v2316_v51 = vadd.f32 %v2171_v19, %v665_v29  ;;  %v1180_v23 = vadd.f32 %v1179_v10, %v2212_v54 }
 0x161   :  { %v667_v34 = vpop.f32.mrf.mxu0  ;;  %v795_v35 = vpop.f32.mrf.mxu1  ;;  %v1253_v29 = vmul.f32 %v2228_v4, %v2228_v4  ;;  %v1315_v54 = vadd.f32 %v1314_v28, %v1252_v40 }
 0x162   :  { %v1181_v53 = vadd.f32 %v1180_v23, %v2225_v3  ;;  %v1258_v23 = vmul.f32 %v2273_v58, %v2273_v58 }
 0x163   :  { %v668_v47 = vpop.f32.mrf.mxu0  ;;  %v796_v48 = vpop.f32.mrf.mxu1  ;;  %v1316_v49 = vadd.f32 %v1315_v54, %v1253_v29  ;;  %v1259_v54 = vmul.f32 %v2276_v59, %v2276_v59 }
 0x164   :  { %v2319_v56 = vadd.f32 %v2171_v19, %v668_v47  ;;  %v2322_v57 = vadd.f32 %v2171_v19, %v796_v48  ;;  %v1182_v47 = vadd.f32 %v1181_v53, %v2228_v4  ;;  %v1256_v4 = vmul.f32 %v2257_v37, %v2257_v37 }
 0x165   :  { %v670_v61 = vpop.f32.mrf.mxu0  ;;  %v798_v62 = vpop.f32.mrf.mxu1  ;;  %v1317_v63 = vadd.f32 %v1316_v49, %v1254_v43 }
 0x166   :  { %v1677_v39 = vpack.c.bf16 %v2319_v56, %v2316_v51  ;;  %v1757_v1 = vpack.c.bf16 %v2322_v57, %v2310_v44  ;;  %v1183_v62 = vadd.f32 %v1182_v47, %v2241_v17 }
 0x167   :  { %v673_v7 = vpop.f32.mrf.mxu0  ;;  %v801_v8 = vpop.f32.mrf.mxu1 }
 0x168   :  { %1801 = vst [vmem:[#allocation7 + $0x40] sm:$0xff] %v1677_v39   ;;  %1817 = vst [vmem:[#allocation7 + $0xc0] sm:$0xff] %v1757_v1   ;;  %v2338_v24 = vadd.f32 %v2171_v19, %v801_v8  ;;  %v2344_v32 = vadd.f32 %v2171_v19, %v673_v7  ;;  %v1184_v2 = vadd.f32 %v1183_v62, %v2244_v18 }
 0x169   :  { %v675_v16 = vpop.f32.mrf.mxu0  ;;  %v803_v21 = vpop.f32.mrf.mxu1  ;;  %v1318_v7 = vadd.f32 %v1317_v63, %v1255_v25  ;;  %v1257_v8 = vmul.f32 %v2260_v38, %v2260_v38 }
 0x16a   :  { %v1185_v17 = vadd.f32 %v1184_v2, %v2257_v37 }
 0x16b   :  { %v676_v30 = vpop.f32.mrf.mxu0  ;;  %v804_v31 = vpop.f32.mrf.mxu1  ;;  %v1319_v18 = vadd.f32 %v1318_v7, %v1256_v4 }
 0x16c   :  { %v2347_v34 = vadd.f32 %v2171_v19, %v676_v30  ;;  %v2350_v35 = vadd.f32 %v2171_v19, %v804_v31  ;;  %v1186_v30 = vadd.f32 %v1185_v17, %v2260_v38  ;;  %v1260_v38 = vmul.f32 %v2289_v12, %v2289_v12 }
 0x16d   :  { %v678_v45 = vpop.f32.mrf.mxu0  ;;  %v806_v46 = vpop.f32.mrf.mxu1  ;;  %v1320_v53 = vadd.f32 %v1319_v18, %v1257_v8  ;;  %v1263_v18 = vmul.f32 %v2319_v56, %v2319_v56 }
 0x16e   :  { %v1682_v3 = vpack.c.bf16 %v2347_v34, %v2344_v32  ;;  %v1762_v48 = vpack.c.bf16 %v2350_v35, %v2338_v24  ;;  %v1187_v46 = vadd.f32 %v1186_v30, %v2273_v58 }
 0x16f   :  { %v681_v26 = vpop.f32.mrf.mxu0  ;;  %v809_v61 = vpop.f32.mrf.mxu1  ;;  %v1321_v47 = vadd.f32 %v1320_v53, %v1258_v23 }
 0x170   :  { %1802 = vst [vmem:[#allocation7 + $0x48] sm:$0xff] %v1682_v3   ;;  %1818 = vst [vmem:[#allocation7 + $0xc8] sm:$0xff] %v1762_v48   ;;  %v2366_v6 = vadd.f32 %v2171_v19, %v809_v61  ;;  %v2372_v40 = vadd.f32 %v2171_v19, %v681_v26  ;;  %v1188_v49 = vadd.f32 %v1187_v46, %v2276_v59 }
 0x171   :  { %v683_v39 = vpop.f32.mrf.mxu0  ;;  %v811_v1 = vpop.f32.mrf.mxu1  ;;  %v1322_v26 = vadd.f32 %v1321_v47, %v1259_v54  ;;  %v1261_v61 = vmul.f32 %v2292_v13, %v2292_v13  ;;  %v1262_v59 = vmul.f32 %v2316_v51, %v2316_v51 }
 0x172   :  { %v1189_v58 = vadd.f32 %v1188_v49, %v2289_v12 }
 0x173   :  { %v684_v10 = vpop.f32.mrf.mxu0  ;;  %v812_v11 = vpop.f32.mrf.mxu1  ;;  %v1323_v2 = vadd.f32 %v1322_v26, %v1260_v38 }
 0x174   :  { %v2375_v16 = vadd.f32 %v2171_v19, %v684_v10  ;;  %v2378_v21 = vadd.f32 %v2171_v19, %v812_v11  ;;  %v1190_v10 = vadd.f32 %v1189_v58, %v2292_v13 }
 0x175   :  { %v686_v28 = vpop.f32.mrf.mxu0  ;;  %v814_v29 = vpop.f32.mrf.mxu1  ;;  %v1324_v12 = vadd.f32 %v1323_v2, %v1261_v61 }
 0x176   :  { %v1687_v37 = vpack.c.bf16 %v2375_v16, %v2372_v40  ;;  %v1767_v31 = vpack.c.bf16 %v2378_v21, %v2366_v6  ;;  %v1191_v29 = vadd.f32 %v1190_v10, %v2316_v51  ;;  %v1267_v2 = vmul.f32 %v2375_v16, %v2375_v16 }
 0x177   :  { %v689_v43 = vpop.f32.mrf.mxu0  ;;  %v817_v45 = vpop.f32.mrf.mxu1  ;;  %v1325_v30 = vadd.f32 %v1324_v12, %v1262_v59 }
 0x178   :  { %1803 = vst [vmem:[#allocation7 + $0x50] sm:$0xff] %v1687_v37   ;;  %1819 = vst [vmem:[#allocation7 + $0xd0] sm:$0xff] %v1767_v31   ;;  %v2394_v25 = vadd.f32 %v2171_v19, %v817_v45  ;;  %v690_v4 = vadd.f32 %v2171_v19, %v689_v43  ;;  %v1264_v37 = vmul.f32 %v2344_v32, %v2344_v32 }
 0x179   :  { %v691_v3 = vpop.f32.mrf.mxu0  ;;  %v819_v48 = vpop.f32.mrf.mxu1  ;;  %v1192_v53 = vadd.f32 %v1191_v29, %v2319_v56  ;;  %v1326_v43 = vadd.f32 %v1325_v30, %v1263_v18  ;;  %v1265_v45 = vmul.f32 %v2347_v34, %v2347_v34  ;;  %v1266_v56 = vmul.f32 %v2372_v40, %v2372_v40 }
 0x17b   :  { %v692_v62 = vpop.f32.mrf.mxu0  ;;  %v820_v63 = vpop.f32.mrf.mxu1  ;;  %v1193_v51 = vadd.f32 %v1192_v53, %v2344_v32  ;;  %v1327_v49 = vadd.f32 %v1326_v43, %v1264_v37 }
 0x17c   :  { %v693_v39 = vadd.f32 %v2171_v19, %v692_v62  ;;  %v2402_v1 = vadd.f32 %v2171_v19, %v820_v63 }
 0x17d   :  { %v694_v7 = vpop.f32.mrf.mxu0  ;;  %v822_v8 = vpop.f32.mrf.mxu1  ;;  %v1194_v62 = vadd.f32 %v1193_v51, %v2347_v34  ;;  %v1328_v32 = vadd.f32 %v1327_v49, %v1265_v45 }
 0x17e   :  { %v1692_v11 = vpack.c.bf16 %v693_v39, %v690_v4  ;;  %v1772_v17 = vpack.c.bf16 %v2402_v1, %v2394_v25 }
 0x17f   :  { %v697_v23 = vpop.f32.mrf.mxu0  ;;  %v825_v28 = vpop.f32.mrf.mxu1  ;;  %v1195_v8 = vadd.f32 %v1194_v62, %v2372_v40  ;;  %v1329_v10 = vadd.f32 %v1328_v32, %v1266_v56 }
 0x180   :  { %1804 = vst [vmem:[#allocation7 + $0x58] sm:$0xff] %v1692_v11   ;;  %1820 = vst [vmem:[#allocation7 + $0xd8] sm:$0xff] %v1772_v17   ;;  %v2416_v54 = vadd.f32 %v2171_v19, %v825_v28  ;;  %v698_v38 = vadd.f32 %v2171_v19, %v697_v23  ;;  %v1268_v11 = vmul.f32 %v690_v4, %v690_v4 }
 0x181   :  { %v699_v31 = vpop.f32.mrf.mxu0  ;;  %v827_v13 = vpop.f32.mrf.mxu1  ;;  %v1196_v34 = vadd.f32 %v1195_v8, %v2375_v16  ;;  %v1330_v23 = vadd.f32 %v1329_v10, %v1267_v2  ;;  %v1269_v28 = vmul.f32 %v693_v39, %v693_v39 }
 0x182   :  { %v1270_v43 = vmul.f32 %v698_v38, %v698_v38 }
 0x183   :  { %v700_v46 = vpop.f32.mrf.mxu0  ;;  %v828_v47 = vpop.f32.mrf.mxu1  ;;  %v1197_v37 = vadd.f32 %v1196_v34, %v690_v4  ;;  %v1331_v53 = vadd.f32 %v1330_v23, %v1268_v11 }
 0x184   :  { %v701_v3 = vadd.f32 %v2171_v19, %v700_v46  ;;  %v2424_v48 = vadd.f32 %v2171_v19, %v828_v47 }
 0x185   :  { %v702_v26 = vpop.f32.mrf.mxu0  ;;  %v830_v61 = vpop.f32.mrf.mxu1  ;;  %v1198_v16 = vadd.f32 %v1197_v37, %v693_v39  ;;  %v1332_v49 = vadd.f32 %v1331_v53, %v1269_v28 }
 0x186   :  { %v1697_v63 = vpack.c.bf16 %v701_v3, %v698_v38  ;;  %v1777_v58 = vpack.c.bf16 %v2424_v48, %v2416_v54  ;;  %v1271_v56 = vmul.f32 %v701_v3, %v701_v3 }
 0x187   :  { %v705_v59 = vpop.f32.mrf.mxu0  ;;  %v833_v7 = vpop.f32.mrf.mxu1  ;;  %v1199_v61 = vadd.f32 %v1198_v16, %v698_v38  ;;  %v1333_v62 = vadd.f32 %v1332_v49, %v1270_v43 }
 0x188   :  { %1805 = vst [vmem:[#allocation7 + $0x60] sm:$0xff] %v1697_v63   ;;  %1821 = vst [vmem:[#allocation7 + $0xe0] sm:$0xff] %v1777_v58   ;;  %v2436_v18 = vadd.f32 %v2171_v19, %v833_v7  ;;  %v706_v31 = vadd.f32 %v2171_v19, %v705_v59 }
 0x189   :  { %v707_v17 = vpop.f32.mrf.mxu0  ;;  %v835_v12 = vpop.f32.mrf.mxu1  ;;  %v1200_v59 = vadd.f32 %v1199_v61, %v701_v3  ;;  %v1334_v7 = vadd.f32 %v1333_v62, %v1271_v56 }
 0x18a   :  { %v1272_v63 = vmul.f32 %v706_v31, %v706_v31 }
 0x18b   :  { %v708_v29 = vpop.f32.mrf.mxu0  ;;  %v836_v30 = vpop.f32.mrf.mxu1  ;;  %v1201_v17 = vadd.f32 %v1200_v59, %v706_v31 }
 0x18c   :  { %v709_v40 = vadd.f32 %v2171_v19, %v708_v29  ;;  %v2441_v13 = vadd.f32 %v2171_v19, %v836_v30  ;;  %v1335_v34 = vadd.f32 %v1334_v7, %v1272_v63 }
 0x18d   :  { %v710_v45 = vpop.f32.mrf.mxu0  ;;  %v838_v46 = vpop.f32.mrf.mxu1 }
 0x18e   :  { %v1702_v47 = vpack.c.bf16 %v709_v40, %v706_v31  ;;  %v1782_v51 = vpack.c.bf16 %v2441_v13, %v2436_v18  ;;  %v1273_v8 = vmul.f32 %v709_v40, %v709_v40  ;;  %v1202_v30 = vadd.f32 %v1201_v17, %v709_v40 }
 0x18f   :  { %v713_v26 = vpop.f32.mrf.mxu0  ;;  %v841_v4 = vpop.f32.mrf.mxu1 }
 0x190   :  { %1806 = vst [vmem:[#allocation7 + $0x68] sm:$0xff] %v1702_v47   ;;  %1822 = vst [vmem:[#allocation7 + $0xe8] sm:$0xff] %v1782_v51   ;;  %v714_v58 = vadd.f32 %v2171_v19, %v713_v26  ;;  %v2447_v39 = vadd.f32 %v2171_v19, %v841_v4  ;;  %v1336_v53 = vadd.f32 %v1335_v34, %v1273_v8 }
 0x191   :  { %v715_v32 = vpop.f32.mrf.mxu0  ;;  %v843_v2 = vpop.f32.mrf.mxu1 }
 0x192   :  { %v1274_v23 = vmul.f32 %v714_v58, %v714_v58  ;;  %v1203_v16 = vadd.f32 %v1202_v30, %v714_v58 }
 0x193   :  { %v716_v10 = vpop.f32.mrf.mxu0  ;;  %v844_v11 = vpop.f32.mrf.mxu1 }
 0x194   :  { %v717_v12 = vadd.f32 %v2171_v19, %v716_v10  ;;  %v2451_v38 = vadd.f32 %v2171_v19, %v844_v11  ;;  %v1337_v47 = vadd.f32 %v1336_v53, %v1274_v23 }
 0x195   :  { %v718_v28 = vpop.f32.mrf.mxu0  ;;  %v846_v29 = vpop.f32.mrf.mxu1 }
 0x196   :  { %v1707_v37 = vpack.c.bf16 %v717_v12, %v714_v58  ;;  %v1787_v3 = vpack.c.bf16 %v2451_v38, %v2447_v39  ;;  %v1275_v43 = vmul.f32 %v717_v12, %v717_v12  ;;  %v1204_v56 = vadd.f32 %v1203_v16, %v717_v12 }
 0x197   :  { %v721_v45 = vpop.f32.mrf.mxu0  ;;  %v849_v46 = vpop.f32.mrf.mxu1  ;;  %v1278_v12 = vmul.f32 %v2174_v22, %v2174_v22 }
 0x198   :  { %1807 = vst [vmem:[#allocation7 + $0x70] sm:$0xff] %v1707_v37   ;;  %v722_v31 = vadd.f32 %v2171_v19, %v721_v45  ;;  %1823 = vst [vmem:[#allocation7 + $0xf0] sm:$0xff] %v1787_v3   ;;  %v2457_v40 = vadd.f32 %v2171_v19, %v849_v46  ;;  %v1338_v4 = vadd.f32 %v1337_v47, %v1275_v43 }
 0x199   :  { %v723_v51 = vpop.f32.mrf.mxu0  ;;  %v851_v49 = vpop.f32.mrf.mxu1 }
 0x19a   :  { %v1276_v26 = vmul.f32 %v722_v31, %v722_v31  ;;  %v1205_v63 = vadd.f32 %v1204_v56, %v722_v31 }
 0x19b   :  { %v724_v61 = vpop.f32.mrf.mxu0  ;;  %v852_v62 = vpop.f32.mrf.mxu1 }
 0x19c   :  { %v725_v58 = vadd.f32 %v2171_v19, %v724_v61  ;;  %v2461_v32 = vadd.f32 %v2171_v19, %v852_v62  ;;  %v1339_v2 = vadd.f32 %v1338_v4, %v1276_v26 }
 0x19d   :  { %v726_v59 = vpop.f32.mrf.mxu0  ;;  %v854_v7 = vpop.f32.mrf.mxu1 }
 0x19e   :  { %v1712_v8 = vpack.c.bf16 %v725_v58, %v722_v31  ;;  %v1206_v10 = vadd.f32 %v1205_v63, %v725_v58  ;;  %v1277_v11 = vmul.f32 %v725_v58, %v725_v58  ;;  %v1792_v17 = vpack.c.bf16 %v2461_v32, %v2457_v40 }
 0x1a0   :  { %1808 = vst [vmem:[#allocation7 + $0x78] sm:$0xff] %v1712_v8   ;;  %v1207_v34 = vadd.f32 %v1206_v10, %v2174_v22  ;;  %v1340_v23 = vadd.f32 %v1339_v2, %v1277_v11  ;;  %1824 = vst [vmem:[#allocation7 + $0xf8] sm:$0xff] %v1792_v17  }
 0x1a1   :  { %2030 = shalt.err (!%p2027_p0)
}
 0x1a2   :  { %1391 = dma.vmem_to_hbm [thread:$0]  %s1386_s7, 4096, %s2576_s3, [#allocation4], %s2091_s28, %s2091_s28, %s2092_s29   ;;  %v1279_v19 = vmul.f32 %v2183_v27, %v2183_v27  ;;  %v1208_v22 = vadd.f32 %v1207_v34, %v2183_v27  ;;  %v1341_v28 = vadd.f32 %v1340_v23, %v1278_v12  ;;  %v1280_v29 = vmul.f32 %v2190_v36, %v2190_v36 }
 0x1a3   :  { %v1281_v3 = vmul.f32 %v2199_v41, %v2199_v41  ;;  %v1282_v45 = vmul.f32 %v2206_v50, %v2206_v50  ;;  %v1283_v27 = vmul.f32 %v2215_v55, %v2215_v55  ;;  %s2095_s3 = smov [#allocation8]   ;;  %s2096_s12 = smov [#allocation10]  }
 0x1a4   :  { %v1209_v30 = vadd.f32 %v1208_v22, %v2190_v36  ;;  %v1342_v37 = vadd.f32 %v1341_v28, %v1279_v19  ;;  %v1284_v36 = vmul.f32 %v2222_v0, %v2222_v0  ;;  %s1398_s11 = sshll.u32 %s2095_s3, 4  ;;  %s1408_s13 = sshll.u32 %s2096_s12, 4  ;;  %s1399_s11 = int_to_ptr.vmem [resolvable:$true] %s1398_s11  ;;  %s1409_s13 = int_to_ptr.vmem [resolvable:$true] %s1408_s13 }
 0x1a5   :  { %s2039_s14 = scalar_lea.vmem %s1399_s11, 16  ;;  %s2043_s15 = scalar_lea.vmem %s1399_s11, 32 }
 0x1a6   :  { %v1210_v53 = vadd.f32 %v1209_v30, %v2199_v41  ;;  %v1343_v43 = vadd.f32 %v1342_v37, %v1280_v29  ;;  %v1285_v41 = vmul.f32 %v2231_v5, %v2231_v5  ;;  %v1295_v29 = vmul.f32 %v2322_v57, %v2322_v57  ;;  %p2040_p1 = scmp.ne.s32.totalorder %s1399_s11, %s2039_s14  ;;  %p2044_p2 = scmp.lt.s32.totalorder %s1399_s11, %s1399_s11 }
 0x1a7   :  { %p2045_p3 = scmp.lt.s32.totalorder %s2043_s15, %s2039_s14 }
 0x1a8   :  { %v1211_v46 = vadd.f32 %v1210_v53, %v2206_v50  ;;  %v1344_v16 = vadd.f32 %v1343_v43, %v1281_v3  ;;  %v1286_v50 = vmul.f32 %v2238_v14, %v2238_v14  ;;  %v1296_v3 = vmul.f32 %v2338_v24, %v2338_v24 }
 0x1a9   :  { %v1297_v43 = vmul.f32 %v2350_v35, %v2350_v35  ;;  %p2046_p4 = por %p2045_p3, %p2044_p2 }
 0x1aa   :  { %v1212_v31 = vadd.f32 %v1211_v46, %v2215_v55  ;;  %v1345_v47 = vadd.f32 %v1344_v16, %v1282_v45  ;;  %v1287_v55 = vmul.f32 %v2247_v20, %v2247_v20  ;;  %v1298_v46 = vmul.f32 %v2366_v6, %v2366_v6 }
 0x1ab   :  { %p2047_p5 = pnand %p2046_p4, %p2040_p1 }
 0x1ac   :  { %v1213_v51 = vadd.f32 %v1212_v31, %v2222_v0  ;;  %v1346_v49 = vadd.f32 %v1345_v47, %v1283_v27  ;;  %v1288_v0 = vmul.f32 %v2254_v33, %v2254_v33  ;;  %v1299_v27 = vmul.f32 %v2378_v21, %v2378_v21 }
 0x1ad   :  { %v1300_v47 = vmul.f32 %v2394_v25, %v2394_v25 }
 0x1ae   :  { %v1214_v56 = vadd.f32 %v1213_v51, %v2231_v5  ;;  %v1347_v26 = vadd.f32 %v1346_v49, %v1284_v36  ;;  %v1289_v5 = vmul.f32 %v2263_v42, %v2263_v42  ;;  %v1301_v51 = vmul.f32 %v2402_v1, %v2402_v1 }
 0x1b0   :  { %v1348_v4 = vadd.f32 %v1347_v26, %v1285_v41  ;;  %v1215_v61 = vadd.f32 %v1214_v56, %v2238_v14  ;;  %v1290_v14 = vmul.f32 %v2270_v52, %v2270_v52  ;;  %v1302_v41 = vmul.f32 %v2416_v54, %v2416_v54 }
 0x1b1   :  { %v1303_v26 = vmul.f32 %v2424_v48, %v2424_v48 }
 0x1b2   :  { %v1216_v62 = vadd.f32 %v1215_v61, %v2247_v20  ;;  %v1349_v63 = vadd.f32 %v1348_v4, %v1286_v50  ;;  %v1291_v20 = vmul.f32 %v2279_v60, %v2279_v60  ;;  %v1304_v4 = vmul.f32 %v2436_v18, %v2436_v18 }
 0x1b4   :  { %v1217_v58 = vadd.f32 %v1216_v62, %v2254_v33  ;;  %v1350_v2 = vadd.f32 %v1349_v63, %v1287_v55  ;;  %v1292_v33 = vmul.f32 %v2286_v9, %v2286_v9  ;;  %v1305_v55 = vmul.f32 %v2441_v13, %v2441_v13 }
 0x1b5   :  { %v1306_v63 = vmul.f32 %v2447_v39, %v2447_v39 }
 0x1b6   :  { %v1218_v59 = vadd.f32 %v1217_v58, %v2263_v42  ;;  %v1351_v7 = vadd.f32 %v1350_v2, %v1288_v0  ;;  %v1293_v42 = vmul.f32 %v2295_v15, %v2295_v15  ;;  %v1307_v58 = vmul.f32 %v2451_v38, %v2451_v38 }
 0x1b8   :  { %v1219_v8 = vadd.f32 %v1218_v59, %v2270_v52  ;;  %v1352_v10 = vadd.f32 %v1351_v7, %v1289_v5  ;;  %v1294_v52 = vmul.f32 %v2310_v44, %v2310_v44  ;;  %v1308_v5 = vmul.f32 %v2457_v40, %v2457_v40 }
 0x1b9   :  { %v1309_v7 = vmul.f32 %v2461_v32, %v2461_v32 }
 0x1ba   :  { %v1220_v11 = vadd.f32 %v1219_v8, %v2279_v60  ;;  %v1353_v17 = vadd.f32 %v1352_v10, %v1290_v14 }
 0x1bc   :  { %v1221_v12 = vadd.f32 %v1220_v11, %v2286_v9  ;;  %v1354_v34 = vadd.f32 %v1353_v17, %v1291_v20 }
 0x1be   :  { %v1222_v23 = vadd.f32 %v1221_v12, %v2295_v15  ;;  %v1355_v19 = vadd.f32 %v1354_v34, %v1292_v33 }
 0x1c0   :  { %v1223_v22 = vadd.f32 %v1222_v23, %v2310_v44  ;;  %v1356_v28 = vadd.f32 %v1355_v19, %v1293_v42 }
 0x1c2   :  { %v1224_v60 = vadd.f32 %v1223_v22, %v2322_v57  ;;  %v1357_v30 = vadd.f32 %v1356_v28, %v1294_v52 }
 0x1c4   :  { %v1358_v9 = vadd.f32 %v1357_v30, %v1295_v29  ;;  %v1225_v37 = vadd.f32 %v1224_v60, %v2338_v24 }
 0x1c6   :  { %v1359_v15 = vadd.f32 %v1358_v9, %v1296_v3  ;;  %v1226_v53 = vadd.f32 %v1225_v37, %v2350_v35 }
 0x1c8   :  { %v1360_v44 = vadd.f32 %v1359_v15, %v1297_v43  ;;  %v1227_v45 = vadd.f32 %v1226_v53, %v2366_v6 }
 0x1ca   :  { %v1361_v57 = vadd.f32 %v1360_v44, %v1298_v46  ;;  %v1228_v16 = vadd.f32 %v1227_v45, %v2378_v21 }
 0x1cc   :  { %v1362_v31 = vadd.f32 %v1361_v57, %v1299_v27  ;;  %v1229_v24 = vadd.f32 %v1228_v16, %v2394_v25 }
 0x1ce   :  { %v1363_v36 = vadd.f32 %v1362_v31, %v1300_v47  ;;  %v1230_v35 = vadd.f32 %v1229_v24, %v2402_v1 }
 0x1d0   :  { %v1364_v49 = vadd.f32 %v1363_v36, %v1301_v51  ;;  %v1231_v6 = vadd.f32 %v1230_v35, %v2416_v54 }
 0x1d2   :  { %v1365_v56 = vadd.f32 %v1364_v49, %v1302_v41  ;;  %v1232_v21 = vadd.f32 %v1231_v6, %v2424_v48 }
 0x1d4   :  { %v1366_v50 = vadd.f32 %v1365_v56, %v1303_v26  ;;  %v1233_v25 = vadd.f32 %v1232_v21, %v2436_v18 }
 0x1d6   :  { %v1367_v61 = vadd.f32 %v1366_v50, %v1304_v4  ;;  %v1234_v1 = vadd.f32 %v1233_v25, %v2441_v13 }
 0x1d8   :  { %v1368_v62 = vadd.f32 %v1367_v61, %v1305_v55  ;;  %v1235_v54 = vadd.f32 %v1234_v1, %v2447_v39 }
 0x1da   :  { %v1369_v0 = vadd.f32 %v1368_v62, %v1306_v63  ;;  %v1236_v48 = vadd.f32 %v1235_v54, %v2451_v38 }
 0x1dc   :  { %v1370_v2 = vadd.f32 %v1369_v0, %v1307_v58  ;;  %v1237_v18 = vadd.f32 %v1236_v48, %v2457_v40 }
 0x1de   :  { %v1371_v59 = vadd.f32 %v1370_v2, %v1308_v5  ;;  %v1238_v13 = vadd.f32 %v1237_v18, %v2461_v32 }
 0x1e0   :  { %v1239_v14 = vrot.slane %v1238_v13, 4  ;;  %v1372_v39 = vadd.f32 %v1371_v59, %v1309_v7 }
 0x1e2   :  { %v1240_v8 = vadd.f32 %v1239_v14, %v1238_v13  ;;  %v1373_v10 = vrot.slane %v1372_v39, 4 }
 0x1e4   :  { %v1374_v20 = vadd.f32 %v1373_v10, %v1372_v39  ;;  %v1241_v11 = vrot.slane %v1240_v8, 2 }
 0x1e6   :  { %v1242_v17 = vadd.f32 %v1241_v11, %v1240_v8  ;;  %v1375_v38 = vrot.slane %v1374_v20, 2 }
 0x1e8   :  { %v1243_v33 = vrot.slane %v1242_v17, 1  ;;  %v1376_v12 = vadd.f32 %v1375_v38, %v1374_v20 }
 0x1ea   :  { %v1244_v40 = vadd.f32 %v1243_v33, %v1242_v17  ;;  %v1377_v34 = vrot.slane %v1376_v12, 1 }
 0x1ec   :  { %1245 = vst [vmem:[#allocation8] sm:$0x1] %v1244_v40  ;;  %v1378_v42 = vadd.f32 %v1377_v34, %v1376_v12 }
 0x1ed   :  { %2050 = shalt.err (!%p2047_p5)
}
 0x1ee   :  { %1401 = dma.vmem_to_hbm [thread:$0]  %s1399_s11, 16, %s2577_s4, [#allocation9]   ;;  %1379 = vst [vmem:[#allocation10] sm:$0x1] %v1378_v42 }
 0x1ef   :  { %s2059_s18 = scalar_lea.vmem %s1409_s13, 16  ;;  %s2063_s19 = scalar_lea.vmem %s1409_s13, 32 }
 0x1f0   :  { %p2060_p6 = scmp.ne.s32.totalorder %s1409_s13, %s2059_s18  ;;  %p2064_p7 = scmp.lt.s32.totalorder %s1409_s13, %s1409_s13 }
 0x1f1   :  { %p2065_p8 = scmp.lt.s32.totalorder %s2063_s19, %s2059_s18 }
 0x1f3   :  { %p2066_p9 = por %p2065_p8, %p2064_p7 }
 0x1f5   :  { %p2067_p10 = pnand %p2066_p9, %p2060_p6 }
 0x1f7   :  { %2070 = shalt.err (!%p2067_p10)
}
 0x1f8   :  { %1411 = dma.vmem_to_hbm [thread:$0]  %s1409_s13, 16, %s2578_s5, [#allocation9]  }
 0x1f9   :  { %2083 = dma.done.wait [#allocation4], 4096  }
 0x1fa   :  { %2084 = vsyncadd [#allocation4], 4294963200 }
 0x1fb   :  { %2085 = dma.done.wait [#allocation9], 32  }
 0x1fc   :  { %2086 = vsyncadd [#allocation9], 4294967264 }
 0x1fd   :  { %1421 = vsyncpa [#allocation3], 1 }
 0x1fe   :  { %1422 = vsyncpa [#allocation6], 1 }
 0x1ff   :  { %1423 = vsyncpa [#allocation4], 1 }
 0x200   :  { %1424 = vsyncpa [#allocation9], 1 }

</bundles_post_ra>
